<compile_context>
chip_gen: v5e
topology: v5e:2x2
jax: 0.10.0
libtpu: 0.0.40
codegen_flags: <defaults>
</compile_context>

<pallas_src>
import functools

import jax
import jax.numpy as jnp
from jax.experimental import pallas as pl
from jax.experimental.pallas import tpu as pltpu


SUBLANES = 8  # f32 sublane count; batch tiles are multiples of this.


# --------------------------------------------------------------------------
# Single fused Pallas kernel: all LSTM layers (wavefront) + linear head
# --------------------------------------------------------------------------
def fused_lstm_kernel(*refs, num_layers, hidden_size, seq_len, tile_b):
    """refs layout (inputs, outputs, scratch):
      x_ref      : (T, Bt, D_in)   time-major batch tile (f32)
      h0_ref     : (L, Bt, H)      initial hidden state (f32)
      c0_ref     : (L, Bt, H)      initial cell state   (f32)
      w_ih0_ref  : (D_in, 4H)      layer-0 input weights      (bf16)
      w_hh0_ref  : (H, 4H)         layer-0 recurrent weights  (bf16)
      b0_ref     : (1, 4H)         layer-0 bias (b_ih + b_hh) (f32)
      per layer l in 1..L-1 (2 refs each):
        w_cat_ref: (2H, 4H)        stacked [W_ih; W_hh]       (bf16)
        b_ref    : (1, 4H)         bias                       (f32)
      w_out_ref  : (H, O)          linear head weights        (bf16)
      b_out_ref  : (1, O)          linear head bias           (f32)
      out_ref    : (Bt, O)         output prediction          (f32)
      gx_ref     : (T*Bt, 4H) VMEM scratch: layer-0 precomputed x-gates
    """
    H = hidden_size
    T = seq_len
    Bt = tile_b
    G = 4 * H
    L = num_layers

    x_ref, h0_ref, c0_ref = refs[0], refs[1], refs[2]
    w_ih0_ref, w_hh0_ref, b0_ref = refs[3], refs[4], refs[5]
    upper = [(refs[6 + 2 * (l - 1)], refs[7 + 2 * (l - 1)]) for l in range(1, L)]
    base = 6 + 2 * (L - 1)
    w_out_ref, b_out_ref = refs[base], refs[base + 1]
    out_ref = refs[base + 2]
    gx_ref = refs[base + 3]

    # ---- hoisted constants --------------------------------------------------
    # Lane mask selecting the 'g' gate (tanh) among [i, f, g, o].
    lane = jax.lax.broadcasted_iota(jnp.int32, (Bt, G), 1)
    g_mask = jnp.logical_and(lane >= 2 * H, lane < 3 * H)
    # Pre-scale: x/2 on i/f/o lanes (sigmoid via tanh), x on the g lanes.
    pre_scale = jnp.where(g_mask, 1.0, 0.5).astype(jnp.float32)

    def activate(gates):
        # One EUP pass: tanh over the full (Bt, 4H) vreg.
        # i/f/o lanes: sigmoid(x) = 0.5 * (1 + tanh(x/2));  g lanes: tanh(x).
        z = jnp.tanh(gates * pre_scale)
        return jnp.where(g_mask, z, 0.5 * z + 0.5)

    # ---- layer-0 input projection for ALL timesteps (off the critical path) --
    x2d = x_ref[...].reshape(T * Bt, x_ref.shape[-1]).astype(jnp.bfloat16)
    gx_ref[...] = (
        jnp.dot(x2d, w_ih0_ref[...], preferred_element_type=jnp.float32)
        + b0_ref[...])

    # Hoisted weight loads (small: a few vregs per layer at these shapes).
    # TODO(synk): for large H, keep w_hh resident in the MXU across the
    # recurrence via pltpu.matmul_push_rhs / matmul_acc_lhs / matmul_pop.
    w_hh0 = w_hh0_ref[...]
    upper_w = [(w_ref[...], b_ref[...]) for (w_ref, b_ref) in upper]

    h = [h0_ref[l] for l in range(L)]      # per-layer hidden state (Bt, H) f32
    c = [c0_ref[l] for l in range(L)]      # per-layer cell state   (Bt, H) f32

    def cell_update(l, gates):
        act = activate(gates)
        i_g = act[:, 0 * H:1 * H]
        f_g = act[:, 1 * H:2 * H]
        g_g = act[:, 2 * H:3 * H]
        o_g = act[:, 3 * H:4 * H]
        c[l] = f_g * c[l] + i_g * g_g
        h[l] = o_g * jnp.tanh(c[l])

    # ---- wavefront recurrence over diagonals s = t + l ------------------------
    # Processing layers top-down within a wavefront guarantees layer l reads
    # h[l-1] at time s-l (i.e. BEFORE layer l-1 advances to time s-l+1).
    # T and L are small and static -> fully unrolled (one basic block, full
    # LLO scheduler visibility).  For long T switch to lax.fori_loop(unroll=k).
    for s in range(T + L - 1):
        for l in range(L - 1, -1, -1):
            t = s - l
            if t < 0 or t >= T:
                continue
            if l == 0:
                r0 = t * Bt
                gates = gx_ref[r0:r0 + Bt, :] + jnp.dot(
                    h[0].astype(jnp.bfloat16), w_hh0,
                    preferred_element_type=jnp.float32)
            else:
                w_cat, b_l = upper_w[l - 1]
                # Fused input+recurrent matmul: [x_{l-1,t} ; h_{l,t-1}] @ [W_ih; W_hh]
                cat = jnp.concatenate([h[l - 1], h[l]],
                                      axis=1).astype(jnp.bfloat16)    # (Bt, 2H)
                gates = jnp.dot(cat, w_cat,
                                preferred_element_type=jnp.float32) + b_l
            cell_update(l, gates)

    # ---- fused linear head on the final top-layer hidden state ---------------
    pred = (jnp.dot(h[L - 1].astype(jnp.bfloat16), w_out_ref[...],
                    preferred_element_type=jnp.float32) + b_out_ref[...])
    out_ref[...] = pred.astype(out_ref.dtype)


# --------------------------------------------------------------------------
# Wrapper: padding / layout plumbing + the single pallas_call
# --------------------------------------------------------------------------
def lstm_model_forward(params, input_seq, h_0, c_0):
    """input_seq: (B, T, input_size) batch-first; h_0/c_0: (L, B, H).
    Returns pred: (B, output_size)   (== linear(lstm_output)[:, -1, :])."""
    B, T, D_in = input_seq.shape
    L, _, H = h_0.shape
    O = params["linear"]["w_t"].shape[-1]

    Bp = ((B + SUBLANES - 1) // SUBLANES) * SUBLANES   # pad batch to sublanes
    pad = Bp - B

    x_tm = jnp.transpose(input_seq, (1, 0, 2))         # (T, B, D_in)
    if pad:
        # Batch rows are independent in an LSTM; padded rows are discarded.
        x_tm = jnp.pad(x_tm, ((0, 0), (0, pad), (0, 0)))
        h_0 = jnp.pad(h_0, ((0, 0), (0, pad), (0, 0)))
        c_0 = jnp.pad(c_0, ((0, 0), (0, pad), (0, 0)))

    TILE_B = SUBLANES                                   # batch tile per grid step
    n_tiles = Bp // TILE_B

    # Weight prep: bf16 matmul operands (f32 accumulation in-kernel), f32 biases.
    lstm_p = params["lstm"]
    w_ih0 = lstm_p[0]["w_ih_t"].astype(jnp.bfloat16)    # (D_in, 4H)
    w_hh0 = lstm_p[0]["w_hh_t"].astype(jnp.bfloat16)    # (H, 4H)
    b0 = lstm_p[0]["b"]                                 # (1, 4H)
    upper_weights = []
    for l in range(1, L):
        w_cat = jnp.concatenate(
            [lstm_p[l]["w_ih_t"], lstm_p[l]["w_hh_t"]],
            axis=0).astype(jnp.bfloat16)                # (2H, 4H)
        upper_weights += [w_cat, lstm_p[l]["b"]]
    w_out = params["linear"]["w_t"].astype(jnp.bfloat16)  # (H, O)
    b_out = params["linear"]["b"]                         # (1, O)

    kernel = functools.partial(
        fused_lstm_kernel,
        num_layers=L, hidden_size=H, seq_len=T, tile_b=TILE_B)

    def full(shape):  # whole-array (un-tiled) spec
        return pl.BlockSpec(shape, lambda i: (0, 0))

    in_specs = [
        pl.BlockSpec((T, TILE_B, D_in), lambda i: (0, i, 0)),   # x (batch-tiled)
        pl.BlockSpec((L, TILE_B, H), lambda i: (0, i, 0)),      # h0
        pl.BlockSpec((L, TILE_B, H), lambda i: (0, i, 0)),      # c0
        full((D_in, 4 * H)),                                    # w_ih0
        full((H, 4 * H)),                                       # w_hh0
        full((1, 4 * H)),                                       # b0
    ]
    for _ in range(1, L):
        in_specs += [full((2 * H, 4 * H)), full((1, 4 * H))]
    in_specs += [full((H, O)), full((1, O))]

    # TODO(synk): for production sizes (large T/H/L) chunk T for the hoisted
    # projection and stream per-layer weights via manual double-buffered DMA
    # (memory_space=pl.ANY) to bound VMEM, especially on v7x (64 MiB).
    out = pl.pallas_call(
        kernel,
        out_shape=jax.ShapeDtypeStruct((Bp, O), jnp.float32),
        grid_spec=pltpu.PrefetchScalarGridSpec(
            num_scalar_prefetch=0,
            grid=(n_tiles,),
            in_specs=in_specs,
            out_specs=pl.BlockSpec((TILE_B, O), lambda i: (i, 0)),
            scratch_shapes=[
                pltpu.VMEM((T * TILE_B, 4 * H), jnp.float32),   # layer-0 x-gates
            ],
        ),
        compiler_params=pltpu.CompilerParams(
            dimension_semantics=("parallel",),        # batch tiles -> 2nd TC on v7x
            vmem_limit_bytes=32 * 1024 * 1024,
        ),
    )(x_tm, h_0, c_0, w_ih0, w_hh0, b0, *upper_weights, w_out, b_out)

    return out[:B]                                     # drop padded batch rows


# --------------------------------------------------------------------------
# Pure-JAX reference (f32 everywhere) for a correctness sanity check
# --------------------------------------------------------------------------
def lstm_reference(params, input_seq, h_0, c_0):
    B, T, _ = input_seq.shape
    L, _, H = h_0.shape
    h = [h_0[l] for l in range(L)]
    c = [c_0[l] for l in range(L)]
    for t in range(T):
        x = input_seq[:, t, :]
        for l in range(L):
            p = params["lstm"][l]
            gates = x @ p["w_ih_t"] + h[l] @ p["w_hh_t"] + p["b"]
            i_g = jax.nn.sigmoid(gates[:, 0 * H:1 * H])
            f_g = jax.nn.sigmoid(gates[:, 1 * H:2 * H])
            g_g = jnp.tanh(gates[:, 2 * H:3 * H])
            o_g = jax.nn.sigmoid(gates[:, 3 * H:4 * H])
            c[l] = f_g * c[l] + i_g * g_g
            h[l] = o_g * jnp.tanh(c[l])
            x = h[l]
    return h[L - 1] @ params["linear"]["w_t"] + params["linear"]["b"]


# --------------------------------------------------------------------------
# Parameter init mirroring PyTorch's nn.LSTM / nn.Linear defaults
# --------------------------------------------------------------------------
def init_params(key, input_size, hidden_size, num_layers, output_size):
    """Deterministic init (uniform +-1/sqrt(H) like PyTorch)."""
    params = {"lstm": []}
    bound = 1.0 / jnp.sqrt(jnp.float32(hidden_size))
    for layer in range(num_layers):
        d_in = input_size if layer == 0 else hidden_size
        key, k1, k2, k3, k4 = jax.random.split(key, 5)
        w_ih = jax.random.uniform(k1, (4 * hidden_size, d_in),
                                  jnp.float32, -bound, bound)
        w_hh = jax.random.uniform(k2, (4 * hidden_size, hidden_size),
                                  jnp.float32, -bound, bound)
        b_ih = jax.random.uniform(k3, (4 * hidden_size,),
                                  jnp.float32, -bound, bound)
        b_hh = jax.random.uniform(k4, (4 * hidden_size,),
                                  jnp.float32, -bound, bound)
        params["lstm"].append({
            "w_ih_t": jnp.transpose(w_ih),             # (D_in, 4H)
            "w_hh_t": jnp.transpose(w_hh),             # (H, 4H)
            "b": (b_ih + b_hh)[None, :],               # (1, 4H)
        })
    key, k5, k6 = jax.random.split(key, 3)
    lin_bound = 1.0 / jnp.sqrt(jnp.float32(hidden_size))
    w_lin = jax.random.uniform(k5, (output_size, hidden_size),
                               jnp.float32, -lin_bound, lin_bound)
    b_lin = jax.random.uniform(k6, (output_size,),
                               jnp.float32, -lin_bound, lin_bound)
    params["linear"] = {"w_t": jnp.transpose(w_lin),   # (H, O)
                        "b": b_lin[None, :]}           # (1, O)
    return params


# --------------------------------------------------------------------------
if __name__ == "__main__":
    # Small shapes consistent with the module's forward.
    batch_size = 2
    seq_len = 8
    input_size = 4
    hidden_size = 32
    num_layers = 2
    output_size = 4

    key = jax.random.PRNGKey(0)
    k_params, k_x, k_h0, k_c0 = jax.random.split(key, 4)

    params = init_params(k_params, input_size, hidden_size,
                         num_layers, output_size)

    x = jax.random.normal(k_x, (batch_size, seq_len, input_size), jnp.float32)
    # TODO(synk): PyTorch draws fresh randn h_0/c_0 each forward call; here they
    # are deterministic fixed-key inputs with the same distribution.
    h_0 = jax.random.normal(k_h0, (num_layers, batch_size, hidden_size),
                            jnp.float32)
    c_0 = jax.random.normal(k_c0, (num_layers, batch_size, hidden_size),
                            jnp.float32)

    fwd = jax.jit(lstm_model_forward)
    pred = fwd(params, x, h_0, c_0)
    pred = jax.block_until_ready(pred)

    assert pred.shape == (batch_size, output_size)
    assert pred.dtype == jnp.float32

    # Loose-tolerance check vs. f32 reference (kernel uses bf16 matmul inputs
    # with f32 accumulation).
    ref = lstm_reference(params, x, h_0, c_0)
    assert jnp.max(jnp.abs(pred - ref)) < 5e-2

    print("KERNEL_OK")
</pallas_src>

<mosaic_0001>
module attributes {stable_mosaic.version = 11 : i64} {
  func.func @fused_lstm_kernel(%arg0: i32, %arg1: memref<8x8x4xf32, #tpu.memory_space<vmem>>, %arg2: memref<2x8x32xf32, #tpu.memory_space<vmem>>, %arg3: memref<2x8x32xf32, #tpu.memory_space<vmem>>, %arg4: memref<4x128xbf16, #tpu.memory_space<vmem>>, %arg5: memref<32x128xbf16, #tpu.memory_space<vmem>>, %arg6: memref<1x128xf32, #tpu.memory_space<vmem>>, %arg7: memref<64x128xbf16, #tpu.memory_space<vmem>>, %arg8: memref<1x128xf32, #tpu.memory_space<vmem>>, %arg9: memref<32x4xbf16, #tpu.memory_space<vmem>>, %arg10: memref<1x4xf32, #tpu.memory_space<vmem>>, %arg11: memref<8x4xf32, #tpu.memory_space<vmem>>, %arg12: memref<64x128xf32, #tpu.memory_space<vmem>>) attributes {dimension_semantics = [#tpu.dimension_semantics<parallel>], iteration_bounds = array<i64: 1>, scalar_prefetch = 0 : i64, scratch_operands = 1 : i64, tpu.core_type = #tpu.core_type<tc>, window_params = [{transform_indices = @transform_0, window_bounds = array<i64: 8, 8, 4>}, {transform_indices = @transform_1, window_bounds = array<i64: 2, 8, 32>}, {transform_indices = @transform_2, window_bounds = array<i64: 2, 8, 32>}, {pipeline_mode = #tpu.pipeline_mode<synchronous>, transform_indices = @transform_3, window_bounds = array<i64: 4, 128>}, {pipeline_mode = #tpu.pipeline_mode<synchronous>, transform_indices = @transform_4, window_bounds = array<i64: 32, 128>}, {pipeline_mode = #tpu.pipeline_mode<synchronous>, transform_indices = @transform_5, window_bounds = array<i64: 1, 128>}, {pipeline_mode = #tpu.pipeline_mode<synchronous>, transform_indices = @transform_6, window_bounds = array<i64: 64, 128>}, {pipeline_mode = #tpu.pipeline_mode<synchronous>, transform_indices = @transform_7, window_bounds = array<i64: 1, 128>}, {pipeline_mode = #tpu.pipeline_mode<synchronous>, transform_indices = @transform_8, window_bounds = array<i64: 32, 4>}, {pipeline_mode = #tpu.pipeline_mode<synchronous>, transform_indices = @transform_9, window_bounds = array<i64: 1, 4>}, {transform_indices = @transform_10, window_bounds = array<i64: 8, 4>}]} {
    %0 = tpu.iota {dimensions = array<i32: 1>} : vector<8x128xi32>
    %c64_i32 = arith.constant 64 : i32
    %1 = vector.broadcast %c64_i32 : i32 to vector<8x128xi32>
    %2 = arith.cmpi sge, %0, %1 : vector<8x128xi32>
    %c96_i32 = arith.constant 96 : i32
    %3 = vector.broadcast %c96_i32 : i32 to vector<8x128xi32>
    %4 = arith.cmpi slt, %0, %3 : vector<8x128xi32>
    %5 = arith.andi %2, %4 : vector<8x128xi1>
    %cst = arith.constant 1.000000e+00 : f32
    %cst_0 = arith.constant 5.000000e-01 : f32
    %6 = vector.broadcast %cst : f32 to vector<8x128xf32>
    %7 = vector.broadcast %cst_0 : f32 to vector<8x128xf32>
    %8 = arith.select %5, %6, %7 : vector<8x128xi1>, vector<8x128xf32>
    %c0 = arith.constant 0 : index
    %c0_1 = arith.constant 0 : index
    %c0_2 = arith.constant 0 : index
    %9 = vector.load %arg1[%c0, %c0_1, %c0_2] : memref<8x8x4xf32, #tpu.memory_space<vmem>>, vector<8x8x4xf32>
    %10 = vector.shape_cast %9 : vector<8x8x4xf32> to vector<64x4xf32>
    %11 = arith.truncf %10 : vector<64x4xf32> to vector<64x4xbf16>
    %c0_3 = arith.constant 0 : index
    %c0_4 = arith.constant 0 : index
    %12 = vector.load %arg4[%c0_3, %c0_4] : memref<4x128xbf16, #tpu.memory_space<vmem>>, vector<4x128xbf16>
    %cst_5 = arith.constant dense<0.000000e+00> : vector<64x128xf32>
    %13 = tpu.matmul %11, %12, %cst_5 {dimension_numbers = #tpu.dot_dimension_numbers<[1], [0], [0], [1], [0, 0, 1, 1], [], []>} : vector<64x4xbf16>, vector<4x128xbf16>, vector<64x128xf32> -> vector<64x128xf32>
    %c0_6 = arith.constant 0 : index
    %c0_7 = arith.constant 0 : index
    %14 = vector.load %arg6[%c0_6, %c0_7] : memref<1x128xf32, #tpu.memory_space<vmem>>, vector<1x128xf32>
    %15 = vector.broadcast %14 : vector<1x128xf32> to vector<64x128xf32>
    %16 = arith.addf %13, %15 : vector<64x128xf32>
    %c0_8 = arith.constant 0 : index
    %c0_9 = arith.constant 0 : index
    %17 = vector.load %arg12[%c0_8, %c0_9] : memref<64x128xf32, #tpu.memory_space<vmem>>, vector<64x128xf32>
    tpu.vector_store %arg12[%c0_8, %c0_9], %16 {strides = array<i32>} : memref<64x128xf32, #tpu.memory_space<vmem>>, vector<64x128xf32>,
    %c0_10 = arith.constant 0 : index
    %c0_11 = arith.constant 0 : index
    %18 = vector.load %arg5[%c0_10, %c0_11] : memref<32x128xbf16, #tpu.memory_space<vmem>>, vector<32x128xbf16>
    %c0_12 = arith.constant 0 : index
    %c0_13 = arith.constant 0 : index
    %19 = vector.load %arg7[%c0_12, %c0_13] : memref<64x128xbf16, #tpu.memory_space<vmem>>, vector<64x128xbf16>
    %c0_14 = arith.constant 0 : index
    %c0_15 = arith.constant 0 : index
    %20 = vector.load %arg8[%c0_14, %c0_15] : memref<1x128xf32, #tpu.memory_space<vmem>>, vector<1x128xf32>
    %c0_16 = arith.constant 0 : index
    %c0_17 = arith.constant 0 : index
    %c0_18 = arith.constant 0 : index
    %21 = vector.load %arg2[%c0_16, %c0_17, %c0_18] : memref<2x8x32xf32, #tpu.memory_space<vmem>>, vector<1x8x32xf32>
    %22 = vector.shape_cast %21 : vector<1x8x32xf32> to vector<8x32xf32>
    %c1 = arith.constant 1 : index
    %c0_19 = arith.constant 0 : index
    %c0_20 = arith.constant 0 : index
    %23 = vector.load %arg2[%c1, %c0_19, %c0_20] : memref<2x8x32xf32, #tpu.memory_space<vmem>>, vector<1x8x32xf32>
    %24 = vector.shape_cast %23 : vector<1x8x32xf32> to vector<8x32xf32>
    %c0_21 = arith.constant 0 : index
    %c0_22 = arith.constant 0 : index
    %c0_23 = arith.constant 0 : index
    %25 = vector.load %arg3[%c0_21, %c0_22, %c0_23] : memref<2x8x32xf32, #tpu.memory_space<vmem>>, vector<1x8x32xf32>
    %26 = vector.shape_cast %25 : vector<1x8x32xf32> to vector<8x32xf32>
    %c1_24 = arith.constant 1 : index
    %c0_25 = arith.constant 0 : index
    %c0_26 = arith.constant 0 : index
    %27 = vector.load %arg3[%c1_24, %c0_25, %c0_26] : memref<2x8x32xf32, #tpu.memory_space<vmem>>, vector<1x8x32xf32>
    %28 = vector.shape_cast %27 : vector<1x8x32xf32> to vector<8x32xf32>
    %c0_27 = arith.constant 0 : index
    %c0_28 = arith.constant 0 : index
    %29 = vector.load %arg12[%c0_27, %c0_28] : memref<64x128xf32, #tpu.memory_space<vmem>>, vector<8x128xf32>
    %30 = arith.truncf %22 : vector<8x32xf32> to vector<8x32xbf16>
    %cst_29 = arith.constant dense<0.000000e+00> : vector<8x128xf32>
    %31 = tpu.matmul %30, %18, %cst_29 {dimension_numbers = #tpu.dot_dimension_numbers<[1], [0], [0], [1], [0, 0, 1, 1], [], []>} : vector<8x32xbf16>, vector<32x128xbf16>, vector<8x128xf32> -> vector<8x128xf32>
    %32 = arith.addf %29, %31 : vector<8x128xf32>
    %33 = arith.mulf %32, %8 : vector<8x128xf32>
    %34 = math.tanh %33 : vector<8x128xf32>
    %cst_30 = arith.constant 5.000000e-01 : f32
    %35 = vector.broadcast %cst_30 : f32 to vector<8x128xf32>
    %36 = arith.mulf %35, %34 : vector<8x128xf32>
    %cst_31 = arith.constant 5.000000e-01 : f32
    %37 = vector.broadcast %cst_31 : f32 to vector<8x128xf32>
    %38 = arith.addf %36, %37 : vector<8x128xf32>
    %39 = arith.select %5, %34, %38 : vector<8x128xi1>, vector<8x128xf32>
    %40 = vector.extract_strided_slice %39 {offsets = [0, 0], sizes = [8, 32], strides = [1, 1]} : vector<8x128xf32> to vector<8x32xf32>
    %41 = vector.extract_strided_slice %39 {offsets = [0, 32], sizes = [8, 32], strides = [1, 1]} : vector<8x128xf32> to vector<8x32xf32>
    %42 = vector.extract_strided_slice %39 {offsets = [0, 64], sizes = [8, 32], strides = [1, 1]} : vector<8x128xf32> to vector<8x32xf32>
    %43 = vector.extract_strided_slice %39 {offsets = [0, 96], sizes = [8, 32], strides = [1, 1]} : vector<8x128xf32> to vector<8x32xf32>
    %44 = arith.mulf %41, %26 : vector<8x32xf32>
    %45 = arith.mulf %40, %42 : vector<8x32xf32>
    %46 = arith.addf %44, %45 : vector<8x32xf32>
    %47 = math.tanh %46 : vector<8x32xf32>
    %48 = arith.mulf %43, %47 : vector<8x32xf32>
    %49 = tpu.concatenate %48, %24 in 1 : vector<8x32xf32>, vector<8x32xf32> -> vector<8x64xf32>
    %50 = arith.truncf %49 : vector<8x64xf32> to vector<8x64xbf16>
    %cst_32 = arith.constant dense<0.000000e+00> : vector<8x128xf32>
    %51 = tpu.matmul %50, %19, %cst_32 {dimension_numbers = #tpu.dot_dimension_numbers<[1], [0], [0], [1], [0, 0, 1, 1], [], []>} : vector<8x64xbf16>, vector<64x128xbf16>, vector<8x128xf32> -> vector<8x128xf32>
    %52 = vector.broadcast %20 : vector<1x128xf32> to vector<8x128xf32>
    %53 = arith.addf %51, %52 : vector<8x128xf32>
    %54 = arith.mulf %53, %8 : vector<8x128xf32>
    %55 = math.tanh %54 : vector<8x128xf32>
    %cst_33 = arith.constant 5.000000e-01 : f32
    %56 = vector.broadcast %cst_33 : f32 to vector<8x128xf32>
    %57 = arith.mulf %56, %55 : vector<8x128xf32>
    %cst_34 = arith.constant 5.000000e-01 : f32
    %58 = vector.broadcast %cst_34 : f32 to vector<8x128xf32>
    %59 = arith.addf %57, %58 : vector<8x128xf32>
    %60 = arith.select %5, %55, %59 : vector<8x128xi1>, vector<8x128xf32>
    %61 = vector.extract_strided_slice %60 {offsets = [0, 0], sizes = [8, 32], strides = [1, 1]} : vector<8x128xf32> to vector<8x32xf32>
    %62 = vector.extract_strided_slice %60 {offsets = [0, 32], sizes = [8, 32], strides = [1, 1]} : vector<8x128xf32> to vector<8x32xf32>
    %63 = vector.extract_strided_slice %60 {offsets = [0, 64], sizes = [8, 32], strides = [1, 1]} : vector<8x128xf32> to vector<8x32xf32>
    %64 = vector.extract_strided_slice %60 {offsets = [0, 96], sizes = [8, 32], strides = [1, 1]} : vector<8x128xf32> to vector<8x32xf32>
    %65 = arith.mulf %62, %28 : vector<8x32xf32>
    %66 = arith.mulf %61, %63 : vector<8x32xf32>
    %67 = arith.addf %65, %66 : vector<8x32xf32>
    %68 = math.tanh %67 : vector<8x32xf32>
    %69 = arith.mulf %64, %68 : vector<8x32xf32>
    %c8 = arith.constant 8 : index
    %c0_35 = arith.constant 0 : index
    %70 = vector.load %arg12[%c8, %c0_35] : memref<64x128xf32, #tpu.memory_space<vmem>>, vector<8x128xf32>
    %71 = arith.truncf %48 : vector<8x32xf32> to vector<8x32xbf16>
    %cst_36 = arith.constant dense<0.000000e+00> : vector<8x128xf32>
    %72 = tpu.matmul %71, %18, %cst_36 {dimension_numbers = #tpu.dot_dimension_numbers<[1], [0], [0], [1], [0, 0, 1, 1], [], []>} : vector<8x32xbf16>, vector<32x128xbf16>, vector<8x128xf32> -> vector<8x128xf32>
    %73 = arith.addf %70, %72 : vector<8x128xf32>
    %74 = arith.mulf %73, %8 : vector<8x128xf32>
    %75 = math.tanh %74 : vector<8x128xf32>
    %cst_37 = arith.constant 5.000000e-01 : f32
    %76 = vector.broadcast %cst_37 : f32 to vector<8x128xf32>
    %77 = arith.mulf %76, %75 : vector<8x128xf32>
    %cst_38 = arith.constant 5.000000e-01 : f32
    %78 = vector.broadcast %cst_38 : f32 to vector<8x128xf32>
    %79 = arith.addf %77, %78 : vector<8x128xf32>
    %80 = arith.select %5, %75, %79 : vector<8x128xi1>, vector<8x128xf32>
    %81 = vector.extract_strided_slice %80 {offsets = [0, 0], sizes = [8, 32], strides = [1, 1]} : vector<8x128xf32> to vector<8x32xf32>
    %82 = vector.extract_strided_slice %80 {offsets = [0, 32], sizes = [8, 32], strides = [1, 1]} : vector<8x128xf32> to vector<8x32xf32>
    %83 = vector.extract_strided_slice %80 {offsets = [0, 64], sizes = [8, 32], strides = [1, 1]} : vector<8x128xf32> to vector<8x32xf32>
    %84 = vector.extract_strided_slice %80 {offsets = [0, 96], sizes = [8, 32], strides = [1, 1]} : vector<8x128xf32> to vector<8x32xf32>
    %85 = arith.mulf %82, %46 : vector<8x32xf32>
    %86 = arith.mulf %81, %83 : vector<8x32xf32>
    %87 = arith.addf %85, %86 : vector<8x32xf32>
    %88 = math.tanh %87 : vector<8x32xf32>
    %89 = arith.mulf %84, %88 : vector<8x32xf32>
    %90 = tpu.concatenate %89, %69 in 1 : vector<8x32xf32>, vector<8x32xf32> -> vector<8x64xf32>
    %91 = arith.truncf %90 : vector<8x64xf32> to vector<8x64xbf16>
    %cst_39 = arith.constant dense<0.000000e+00> : vector<8x128xf32>
    %92 = tpu.matmul %91, %19, %cst_39 {dimension_numbers = #tpu.dot_dimension_numbers<[1], [0], [0], [1], [0, 0, 1, 1], [], []>} : vector<8x64xbf16>, vector<64x128xbf16>, vector<8x128xf32> -> vector<8x128xf32>
    %93 = vector.broadcast %20 : vector<1x128xf32> to vector<8x128xf32>
    %94 = arith.addf %92, %93 : vector<8x128xf32>
    %95 = arith.mulf %94, %8 : vector<8x128xf32>
    %96 = math.tanh %95 : vector<8x128xf32>
    %cst_40 = arith.constant 5.000000e-01 : f32
    %97 = vector.broadcast %cst_40 : f32 to vector<8x128xf32>
    %98 = arith.mulf %97, %96 : vector<8x128xf32>
    %cst_41 = arith.constant 5.000000e-01 : f32
    %99 = vector.broadcast %cst_41 : f32 to vector<8x128xf32>
    %100 = arith.addf %98, %99 : vector<8x128xf32>
    %101 = arith.select %5, %96, %100 : vector<8x128xi1>, vector<8x128xf32>
    %102 = vector.extract_strided_slice %101 {offsets = [0, 0], sizes = [8, 32], strides = [1, 1]} : vector<8x128xf32> to vector<8x32xf32>
    %103 = vector.extract_strided_slice %101 {offsets = [0, 32], sizes = [8, 32], strides = [1, 1]} : vector<8x128xf32> to vector<8x32xf32>
    %104 = vector.extract_strided_slice %101 {offsets = [0, 64], sizes = [8, 32], strides = [1, 1]} : vector<8x128xf32> to vector<8x32xf32>
    %105 = vector.extract_strided_slice %101 {offsets = [0, 96], sizes = [8, 32], strides = [1, 1]} : vector<8x128xf32> to vector<8x32xf32>
    %106 = arith.mulf %103, %67 : vector<8x32xf32>
    %107 = arith.mulf %102, %104 : vector<8x32xf32>
    %108 = arith.addf %106, %107 : vector<8x32xf32>
    %109 = math.tanh %108 : vector<8x32xf32>
    %110 = arith.mulf %105, %109 : vector<8x32xf32>
    %c16 = arith.constant 16 : index
    %c0_42 = arith.constant 0 : index
    %111 = vector.load %arg12[%c16, %c0_42] : memref<64x128xf32, #tpu.memory_space<vmem>>, vector<8x128xf32>
    %112 = arith.truncf %89 : vector<8x32xf32> to vector<8x32xbf16>
    %cst_43 = arith.constant dense<0.000000e+00> : vector<8x128xf32>
    %113 = tpu.matmul %112, %18, %cst_43 {dimension_numbers = #tpu.dot_dimension_numbers<[1], [0], [0], [1], [0, 0, 1, 1], [], []>} : vector<8x32xbf16>, vector<32x128xbf16>, vector<8x128xf32> -> vector<8x128xf32>
    %114 = arith.addf %111, %113 : vector<8x128xf32>
    %115 = arith.mulf %114, %8 : vector<8x128xf32>
    %116 = math.tanh %115 : vector<8x128xf32>
    %cst_44 = arith.constant 5.000000e-01 : f32
    %117 = vector.broadcast %cst_44 : f32 to vector<8x128xf32>
    %118 = arith.mulf %117, %116 : vector<8x128xf32>
    %cst_45 = arith.constant 5.000000e-01 : f32
    %119 = vector.broadcast %cst_45 : f32 to vector<8x128xf32>
    %120 = arith.addf %118, %119 : vector<8x128xf32>
    %121 = arith.select %5, %116, %120 : vector<8x128xi1>, vector<8x128xf32>
    %122 = vector.extract_strided_slice %121 {offsets = [0, 0], sizes = [8, 32], strides = [1, 1]} : vector<8x128xf32> to vector<8x32xf32>
    %123 = vector.extract_strided_slice %121 {offsets = [0, 32], sizes = [8, 32], strides = [1, 1]} : vector<8x128xf32> to vector<8x32xf32>
    %124 = vector.extract_strided_slice %121 {offsets = [0, 64], sizes = [8, 32], strides = [1, 1]} : vector<8x128xf32> to vector<8x32xf32>
    %125 = vector.extract_strided_slice %121 {offsets = [0, 96], sizes = [8, 32], strides = [1, 1]} : vector<8x128xf32> to vector<8x32xf32>
    %126 = arith.mulf %123, %87 : vector<8x32xf32>
    %127 = arith.mulf %122, %124 : vector<8x32xf32>
    %128 = arith.addf %126, %127 : vector<8x32xf32>
    %129 = math.tanh %128 : vector<8x32xf32>
    %130 = arith.mulf %125, %129 : vector<8x32xf32>
    %131 = tpu.concatenate %130, %110 in 1 : vector<8x32xf32>, vector<8x32xf32> -> vector<8x64xf32>
    %132 = arith.truncf %131 : vector<8x64xf32> to vector<8x64xbf16>
    %cst_46 = arith.constant dense<0.000000e+00> : vector<8x128xf32>
    %133 = tpu.matmul %132, %19, %cst_46 {dimension_numbers = #tpu.dot_dimension_numbers<[1], [0], [0], [1], [0, 0, 1, 1], [], []>} : vector<8x64xbf16>, vector<64x128xbf16>, vector<8x128xf32> -> vector<8x128xf32>
    %134 = vector.broadcast %20 : vector<1x128xf32> to vector<8x128xf32>
    %135 = arith.addf %133, %134 : vector<8x128xf32>
    %136 = arith.mulf %135, %8 : vector<8x128xf32>
    %137 = math.tanh %136 : vector<8x128xf32>
    %cst_47 = arith.constant 5.000000e-01 : f32
    %138 = vector.broadcast %cst_47 : f32 to vector<8x128xf32>
    %139 = arith.mulf %138, %137 : vector<8x128xf32>
    %cst_48 = arith.constant 5.000000e-01 : f32
    %140 = vector.broadcast %cst_48 : f32 to vector<8x128xf32>
    %141 = arith.addf %139, %140 : vector<8x128xf32>
    %142 = arith.select %5, %137, %141 : vector<8x128xi1>, vector<8x128xf32>
    %143 = vector.extract_strided_slice %142 {offsets = [0, 0], sizes = [8, 32], strides = [1, 1]} : vector<8x128xf32> to vector<8x32xf32>
    %144 = vector.extract_strided_slice %142 {offsets = [0, 32], sizes = [8, 32], strides = [1, 1]} : vector<8x128xf32> to vector<8x32xf32>
    %145 = vector.extract_strided_slice %142 {offsets = [0, 64], sizes = [8, 32], strides = [1, 1]} : vector<8x128xf32> to vector<8x32xf32>
    %146 = vector.extract_strided_slice %142 {offsets = [0, 96], sizes = [8, 32], strides = [1, 1]} : vector<8x128xf32> to vector<8x32xf32>
    %147 = arith.mulf %144, %108 : vector<8x32xf32>
    %148 = arith.mulf %143, %145 : vector<8x32xf32>
    %149 = arith.addf %147, %148 : vector<8x32xf32>
    %150 = math.tanh %149 : vector<8x32xf32>
    %151 = arith.mulf %146, %150 : vector<8x32xf32>
    %c24 = arith.constant 24 : index
    %c0_49 = arith.constant 0 : index
    %152 = vector.load %arg12[%c24, %c0_49] : memref<64x128xf32, #tpu.memory_space<vmem>>, vector<8x128xf32>
    %153 = arith.truncf %130 : vector<8x32xf32> to vector<8x32xbf16>
    %cst_50 = arith.constant dense<0.000000e+00> : vector<8x128xf32>
    %154 = tpu.matmul %153, %18, %cst_50 {dimension_numbers = #tpu.dot_dimension_numbers<[1], [0], [0], [1], [0, 0, 1, 1], [], []>} : vector<8x32xbf16>, vector<32x128xbf16>, vector<8x128xf32> -> vector<8x128xf32>
    %155 = arith.addf %152, %154 : vector<8x128xf32>
    %156 = arith.mulf %155, %8 : vector<8x128xf32>
    %157 = math.tanh %156 : vector<8x128xf32>
    %cst_51 = arith.constant 5.000000e-01 : f32
    %158 = vector.broadcast %cst_51 : f32 to vector<8x128xf32>
    %159 = arith.mulf %158, %157 : vector<8x128xf32>
    %cst_52 = arith.constant 5.000000e-01 : f32
    %160 = vector.broadcast %cst_52 : f32 to vector<8x128xf32>
    %161 = arith.addf %159, %160 : vector<8x128xf32>
    %162 = arith.select %5, %157, %161 : vector<8x128xi1>, vector<8x128xf32>
    %163 = vector.extract_strided_slice %162 {offsets = [0, 0], sizes = [8, 32], strides = [1, 1]} : vector<8x128xf32> to vector<8x32xf32>
    %164 = vector.extract_strided_slice %162 {offsets = [0, 32], sizes = [8, 32], strides = [1, 1]} : vector<8x128xf32> to vector<8x32xf32>
    %165 = vector.extract_strided_slice %162 {offsets = [0, 64], sizes = [8, 32], strides = [1, 1]} : vector<8x128xf32> to vector<8x32xf32>
    %166 = vector.extract_strided_slice %162 {offsets = [0, 96], sizes = [8, 32], strides = [1, 1]} : vector<8x128xf32> to vector<8x32xf32>
    %167 = arith.mulf %164, %128 : vector<8x32xf32>
    %168 = arith.mulf %163, %165 : vector<8x32xf32>
    %169 = arith.addf %167, %168 : vector<8x32xf32>
    %170 = math.tanh %169 : vector<8x32xf32>
    %171 = arith.mulf %166, %170 : vector<8x32xf32>
    %172 = tpu.concatenate %171, %151 in 1 : vector<8x32xf32>, vector<8x32xf32> -> vector<8x64xf32>
    %173 = arith.truncf %172 : vector<8x64xf32> to vector<8x64xbf16>
    %cst_53 = arith.constant dense<0.000000e+00> : vector<8x128xf32>
    %174 = tpu.matmul %173, %19, %cst_53 {dimension_numbers = #tpu.dot_dimension_numbers<[1], [0], [0], [1], [0, 0, 1, 1], [], []>} : vector<8x64xbf16>, vector<64x128xbf16>, vector<8x128xf32> -> vector<8x128xf32>
    %175 = vector.broadcast %20 : vector<1x128xf32> to vector<8x128xf32>
    %176 = arith.addf %174, %175 : vector<8x128xf32>
    %177 = arith.mulf %176, %8 : vector<8x128xf32>
    %178 = math.tanh %177 : vector<8x128xf32>
    %cst_54 = arith.constant 5.000000e-01 : f32
    %179 = vector.broadcast %cst_54 : f32 to vector<8x128xf32>
    %180 = arith.mulf %179, %178 : vector<8x128xf32>
    %cst_55 = arith.constant 5.000000e-01 : f32
    %181 = vector.broadcast %cst_55 : f32 to vector<8x128xf32>
    %182 = arith.addf %180, %181 : vector<8x128xf32>
    %183 = arith.select %5, %178, %182 : vector<8x128xi1>, vector<8x128xf32>
    %184 = vector.extract_strided_slice %183 {offsets = [0, 0], sizes = [8, 32], strides = [1, 1]} : vector<8x128xf32> to vector<8x32xf32>
    %185 = vector.extract_strided_slice %183 {offsets = [0, 32], sizes = [8, 32], strides = [1, 1]} : vector<8x128xf32> to vector<8x32xf32>
    %186 = vector.extract_strided_slice %183 {offsets = [0, 64], sizes = [8, 32], strides = [1, 1]} : vector<8x128xf32> to vector<8x32xf32>
    %187 = vector.extract_strided_slice %183 {offsets = [0, 96], sizes = [8, 32], strides = [1, 1]} : vector<8x128xf32> to vector<8x32xf32>
    %188 = arith.mulf %185, %149 : vector<8x32xf32>
    %189 = arith.mulf %184, %186 : vector<8x32xf32>
    %190 = arith.addf %188, %189 : vector<8x32xf32>
    %191 = math.tanh %190 : vector<8x32xf32>
    %192 = arith.mulf %187, %191 : vector<8x32xf32>
    %c32 = arith.constant 32 : index
    %c0_56 = arith.constant 0 : index
    %193 = vector.load %arg12[%c32, %c0_56] : memref<64x128xf32, #tpu.memory_space<vmem>>, vector<8x128xf32>
    %194 = arith.truncf %171 : vector<8x32xf32> to vector<8x32xbf16>
    %cst_57 = arith.constant dense<0.000000e+00> : vector<8x128xf32>
    %195 = tpu.matmul %194, %18, %cst_57 {dimension_numbers = #tpu.dot_dimension_numbers<[1], [0], [0], [1], [0, 0, 1, 1], [], []>} : vector<8x32xbf16>, vector<32x128xbf16>, vector<8x128xf32> -> vector<8x128xf32>
    %196 = arith.addf %193, %195 : vector<8x128xf32>
    %197 = arith.mulf %196, %8 : vector<8x128xf32>
    %198 = math.tanh %197 : vector<8x128xf32>
    %cst_58 = arith.constant 5.000000e-01 : f32
    %199 = vector.broadcast %cst_58 : f32 to vector<8x128xf32>
    %200 = arith.mulf %199, %198 : vector<8x128xf32>
    %cst_59 = arith.constant 5.000000e-01 : f32
    %201 = vector.broadcast %cst_59 : f32 to vector<8x128xf32>
    %202 = arith.addf %200, %201 : vector<8x128xf32>
    %203 = arith.select %5, %198, %202 : vector<8x128xi1>, vector<8x128xf32>
    %204 = vector.extract_strided_slice %203 {offsets = [0, 0], sizes = [8, 32], strides = [1, 1]} : vector<8x128xf32> to vector<8x32xf32>
    %205 = vector.extract_strided_slice %203 {offsets = [0, 32], sizes = [8, 32], strides = [1, 1]} : vector<8x128xf32> to vector<8x32xf32>
    %206 = vector.extract_strided_slice %203 {offsets = [0, 64], sizes = [8, 32], strides = [1, 1]} : vector<8x128xf32> to vector<8x32xf32>
    %207 = vector.extract_strided_slice %203 {offsets = [0, 96], sizes = [8, 32], strides = [1, 1]} : vector<8x128xf32> to vector<8x32xf32>
    %208 = arith.mulf %205, %169 : vector<8x32xf32>
    %209 = arith.mulf %204, %206 : vector<8x32xf32>
    %210 = arith.addf %208, %209 : vector<8x32xf32>
    %211 = math.tanh %210 : vector<8x32xf32>
    %212 = arith.mulf %207, %211 : vector<8x32xf32>
    %213 = tpu.concatenate %212, %192 in 1 : vector<8x32xf32>, vector<8x32xf32> -> vector<8x64xf32>
    %214 = arith.truncf %213 : vector<8x64xf32> to vector<8x64xbf16>
    %cst_60 = arith.constant dense<0.000000e+00> : vector<8x128xf32>
    %215 = tpu.matmul %214, %19, %cst_60 {dimension_numbers = #tpu.dot_dimension_numbers<[1], [0], [0], [1], [0, 0, 1, 1], [], []>} : vector<8x64xbf16>, vector<64x128xbf16>, vector<8x128xf32> -> vector<8x128xf32>
    %216 = vector.broadcast %20 : vector<1x128xf32> to vector<8x128xf32>
    %217 = arith.addf %215, %216 : vector<8x128xf32>
    %218 = arith.mulf %217, %8 : vector<8x128xf32>
    %219 = math.tanh %218 : vector<8x128xf32>
    %cst_61 = arith.constant 5.000000e-01 : f32
    %220 = vector.broadcast %cst_61 : f32 to vector<8x128xf32>
    %221 = arith.mulf %220, %219 : vector<8x128xf32>
    %cst_62 = arith.constant 5.000000e-01 : f32
    %222 = vector.broadcast %cst_62 : f32 to vector<8x128xf32>
    %223 = arith.addf %221, %222 : vector<8x128xf32>
    %224 = arith.select %5, %219, %223 : vector<8x128xi1>, vector<8x128xf32>
    %225 = vector.extract_strided_slice %224 {offsets = [0, 0], sizes = [8, 32], strides = [1, 1]} : vector<8x128xf32> to vector<8x32xf32>
    %226 = vector.extract_strided_slice %224 {offsets = [0, 32], sizes = [8, 32], strides = [1, 1]} : vector<8x128xf32> to vector<8x32xf32>
    %227 = vector.extract_strided_slice %224 {offsets = [0, 64], sizes = [8, 32], strides = [1, 1]} : vector<8x128xf32> to vector<8x32xf32>
    %228 = vector.extract_strided_slice %224 {offsets = [0, 96], sizes = [8, 32], strides = [1, 1]} : vector<8x128xf32> to vector<8x32xf32>
    %229 = arith.mulf %226, %190 : vector<8x32xf32>
    %230 = arith.mulf %225, %227 : vector<8x32xf32>
    %231 = arith.addf %229, %230 : vector<8x32xf32>
    %232 = math.tanh %231 : vector<8x32xf32>
    %233 = arith.mulf %228, %232 : vector<8x32xf32>
    %c40 = arith.constant 40 : index
    %c0_63 = arith.constant 0 : index
    %234 = vector.load %arg12[%c40, %c0_63] : memref<64x128xf32, #tpu.memory_space<vmem>>, vector<8x128xf32>
    %235 = arith.truncf %212 : vector<8x32xf32> to vector<8x32xbf16>
    %cst_64 = arith.constant dense<0.000000e+00> : vector<8x128xf32>
    %236 = tpu.matmul %235, %18, %cst_64 {dimension_numbers = #tpu.dot_dimension_numbers<[1], [0], [0], [1], [0, 0, 1, 1], [], []>} : vector<8x32xbf16>, vector<32x128xbf16>, vector<8x128xf32> -> vector<8x128xf32>
    %237 = arith.addf %234, %236 : vector<8x128xf32>
    %238 = arith.mulf %237, %8 : vector<8x128xf32>
    %239 = math.tanh %238 : vector<8x128xf32>
    %cst_65 = arith.constant 5.000000e-01 : f32
    %240 = vector.broadcast %cst_65 : f32 to vector<8x128xf32>
    %241 = arith.mulf %240, %239 : vector<8x128xf32>
    %cst_66 = arith.constant 5.000000e-01 : f32
    %242 = vector.broadcast %cst_66 : f32 to vector<8x128xf32>
    %243 = arith.addf %241, %242 : vector<8x128xf32>
    %244 = arith.select %5, %239, %243 : vector<8x128xi1>, vector<8x128xf32>
    %245 = vector.extract_strided_slice %244 {offsets = [0, 0], sizes = [8, 32], strides = [1, 1]} : vector<8x128xf32> to vector<8x32xf32>
    %246 = vector.extract_strided_slice %244 {offsets = [0, 32], sizes = [8, 32], strides = [1, 1]} : vector<8x128xf32> to vector<8x32xf32>
    %247 = vector.extract_strided_slice %244 {offsets = [0, 64], sizes = [8, 32], strides = [1, 1]} : vector<8x128xf32> to vector<8x32xf32>
    %248 = vector.extract_strided_slice %244 {offsets = [0, 96], sizes = [8, 32], strides = [1, 1]} : vector<8x128xf32> to vector<8x32xf32>
    %249 = arith.mulf %246, %210 : vector<8x32xf32>
    %250 = arith.mulf %245, %247 : vector<8x32xf32>
    %251 = arith.addf %249, %250 : vector<8x32xf32>
    %252 = math.tanh %251 : vector<8x32xf32>
    %253 = arith.mulf %248, %252 : vector<8x32xf32>
    %254 = tpu.concatenate %253, %233 in 1 : vector<8x32xf32>, vector<8x32xf32> -> vector<8x64xf32>
    %255 = arith.truncf %254 : vector<8x64xf32> to vector<8x64xbf16>
    %cst_67 = arith.constant dense<0.000000e+00> : vector<8x128xf32>
    %256 = tpu.matmul %255, %19, %cst_67 {dimension_numbers = #tpu.dot_dimension_numbers<[1], [0], [0], [1], [0, 0, 1, 1], [], []>} : vector<8x64xbf16>, vector<64x128xbf16>, vector<8x128xf32> -> vector<8x128xf32>
    %257 = vector.broadcast %20 : vector<1x128xf32> to vector<8x128xf32>
    %258 = arith.addf %256, %257 : vector<8x128xf32>
    %259 = arith.mulf %258, %8 : vector<8x128xf32>
    %260 = math.tanh %259 : vector<8x128xf32>
    %cst_68 = arith.constant 5.000000e-01 : f32
    %261 = vector.broadcast %cst_68 : f32 to vector<8x128xf32>
    %262 = arith.mulf %261, %260 : vector<8x128xf32>
    %cst_69 = arith.constant 5.000000e-01 : f32
    %263 = vector.broadcast %cst_69 : f32 to vector<8x128xf32>
    %264 = arith.addf %262, %263 : vector<8x128xf32>
    %265 = arith.select %5, %260, %264 : vector<8x128xi1>, vector<8x128xf32>
    %266 = vector.extract_strided_slice %265 {offsets = [0, 0], sizes = [8, 32], strides = [1, 1]} : vector<8x128xf32> to vector<8x32xf32>
    %267 = vector.extract_strided_slice %265 {offsets = [0, 32], sizes = [8, 32], strides = [1, 1]} : vector<8x128xf32> to vector<8x32xf32>
    %268 = vector.extract_strided_slice %265 {offsets = [0, 64], sizes = [8, 32], strides = [1, 1]} : vector<8x128xf32> to vector<8x32xf32>
    %269 = vector.extract_strided_slice %265 {offsets = [0, 96], sizes = [8, 32], strides = [1, 1]} : vector<8x128xf32> to vector<8x32xf32>
    %270 = arith.mulf %267, %231 : vector<8x32xf32>
    %271 = arith.mulf %266, %268 : vector<8x32xf32>
    %272 = arith.addf %270, %271 : vector<8x32xf32>
    %273 = math.tanh %272 : vector<8x32xf32>
    %274 = arith.mulf %269, %273 : vector<8x32xf32>
    %c48 = arith.constant 48 : index
    %c0_70 = arith.constant 0 : index
    %275 = vector.load %arg12[%c48, %c0_70] : memref<64x128xf32, #tpu.memory_space<vmem>>, vector<8x128xf32>
    %276 = arith.truncf %253 : vector<8x32xf32> to vector<8x32xbf16>
    %cst_71 = arith.constant dense<0.000000e+00> : vector<8x128xf32>
    %277 = tpu.matmul %276, %18, %cst_71 {dimension_numbers = #tpu.dot_dimension_numbers<[1], [0], [0], [1], [0, 0, 1, 1], [], []>} : vector<8x32xbf16>, vector<32x128xbf16>, vector<8x128xf32> -> vector<8x128xf32>
    %278 = arith.addf %275, %277 : vector<8x128xf32>
    %279 = arith.mulf %278, %8 : vector<8x128xf32>
    %280 = math.tanh %279 : vector<8x128xf32>
    %cst_72 = arith.constant 5.000000e-01 : f32
    %281 = vector.broadcast %cst_72 : f32 to vector<8x128xf32>
    %282 = arith.mulf %281, %280 : vector<8x128xf32>
    %cst_73 = arith.constant 5.000000e-01 : f32
    %283 = vector.broadcast %cst_73 : f32 to vector<8x128xf32>
    %284 = arith.addf %282, %283 : vector<8x128xf32>
    %285 = arith.select %5, %280, %284 : vector<8x128xi1>, vector<8x128xf32>
    %286 = vector.extract_strided_slice %285 {offsets = [0, 0], sizes = [8, 32], strides = [1, 1]} : vector<8x128xf32> to vector<8x32xf32>
    %287 = vector.extract_strided_slice %285 {offsets = [0, 32], sizes = [8, 32], strides = [1, 1]} : vector<8x128xf32> to vector<8x32xf32>
    %288 = vector.extract_strided_slice %285 {offsets = [0, 64], sizes = [8, 32], strides = [1, 1]} : vector<8x128xf32> to vector<8x32xf32>
    %289 = vector.extract_strided_slice %285 {offsets = [0, 96], sizes = [8, 32], strides = [1, 1]} : vector<8x128xf32> to vector<8x32xf32>
    %290 = arith.mulf %287, %251 : vector<8x32xf32>
    %291 = arith.mulf %286, %288 : vector<8x32xf32>
    %292 = arith.addf %290, %291 : vector<8x32xf32>
    %293 = math.tanh %292 : vector<8x32xf32>
    %294 = arith.mulf %289, %293 : vector<8x32xf32>
    %295 = tpu.concatenate %294, %274 in 1 : vector<8x32xf32>, vector<8x32xf32> -> vector<8x64xf32>
    %296 = arith.truncf %295 : vector<8x64xf32> to vector<8x64xbf16>
    %cst_74 = arith.constant dense<0.000000e+00> : vector<8x128xf32>
    %297 = tpu.matmul %296, %19, %cst_74 {dimension_numbers = #tpu.dot_dimension_numbers<[1], [0], [0], [1], [0, 0, 1, 1], [], []>} : vector<8x64xbf16>, vector<64x128xbf16>, vector<8x128xf32> -> vector<8x128xf32>
    %298 = vector.broadcast %20 : vector<1x128xf32> to vector<8x128xf32>
    %299 = arith.addf %297, %298 : vector<8x128xf32>
    %300 = arith.mulf %299, %8 : vector<8x128xf32>
    %301 = math.tanh %300 : vector<8x128xf32>
    %cst_75 = arith.constant 5.000000e-01 : f32
    %302 = vector.broadcast %cst_75 : f32 to vector<8x128xf32>
    %303 = arith.mulf %302, %301 : vector<8x128xf32>
    %cst_76 = arith.constant 5.000000e-01 : f32
    %304 = vector.broadcast %cst_76 : f32 to vector<8x128xf32>
    %305 = arith.addf %303, %304 : vector<8x128xf32>
    %306 = arith.select %5, %301, %305 : vector<8x128xi1>, vector<8x128xf32>
    %307 = vector.extract_strided_slice %306 {offsets = [0, 0], sizes = [8, 32], strides = [1, 1]} : vector<8x128xf32> to vector<8x32xf32>
    %308 = vector.extract_strided_slice %306 {offsets = [0, 32], sizes = [8, 32], strides = [1, 1]} : vector<8x128xf32> to vector<8x32xf32>
    %309 = vector.extract_strided_slice %306 {offsets = [0, 64], sizes = [8, 32], strides = [1, 1]} : vector<8x128xf32> to vector<8x32xf32>
    %310 = vector.extract_strided_slice %306 {offsets = [0, 96], sizes = [8, 32], strides = [1, 1]} : vector<8x128xf32> to vector<8x32xf32>
    %311 = arith.mulf %308, %272 : vector<8x32xf32>
    %312 = arith.mulf %307, %309 : vector<8x32xf32>
    %313 = arith.addf %311, %312 : vector<8x32xf32>
    %314 = math.tanh %313 : vector<8x32xf32>
    %315 = arith.mulf %310, %314 : vector<8x32xf32>
    %c56 = arith.constant 56 : index
    %c0_77 = arith.constant 0 : index
    %316 = vector.load %arg12[%c56, %c0_77] : memref<64x128xf32, #tpu.memory_space<vmem>>, vector<8x128xf32>
    %317 = arith.truncf %294 : vector<8x32xf32> to vector<8x32xbf16>
    %cst_78 = arith.constant dense<0.000000e+00> : vector<8x128xf32>
    %318 = tpu.matmul %317, %18, %cst_78 {dimension_numbers = #tpu.dot_dimension_numbers<[1], [0], [0], [1], [0, 0, 1, 1], [], []>} : vector<8x32xbf16>, vector<32x128xbf16>, vector<8x128xf32> -> vector<8x128xf32>
    %319 = arith.addf %316, %318 : vector<8x128xf32>
    %320 = arith.mulf %319, %8 : vector<8x128xf32>
    %321 = math.tanh %320 : vector<8x128xf32>
    %cst_79 = arith.constant 5.000000e-01 : f32
    %322 = vector.broadcast %cst_79 : f32 to vector<8x128xf32>
    %323 = arith.mulf %322, %321 : vector<8x128xf32>
    %cst_80 = arith.constant 5.000000e-01 : f32
    %324 = vector.broadcast %cst_80 : f32 to vector<8x128xf32>
    %325 = arith.addf %323, %324 : vector<8x128xf32>
    %326 = arith.select %5, %321, %325 : vector<8x128xi1>, vector<8x128xf32>
    %327 = vector.extract_strided_slice %326 {offsets = [0, 0], sizes = [8, 32], strides = [1, 1]} : vector<8x128xf32> to vector<8x32xf32>
    %328 = vector.extract_strided_slice %326 {offsets = [0, 32], sizes = [8, 32], strides = [1, 1]} : vector<8x128xf32> to vector<8x32xf32>
    %329 = vector.extract_strided_slice %326 {offsets = [0, 64], sizes = [8, 32], strides = [1, 1]} : vector<8x128xf32> to vector<8x32xf32>
    %330 = vector.extract_strided_slice %326 {offsets = [0, 96], sizes = [8, 32], strides = [1, 1]} : vector<8x128xf32> to vector<8x32xf32>
    %331 = arith.mulf %328, %292 : vector<8x32xf32>
    %332 = arith.mulf %327, %329 : vector<8x32xf32>
    %333 = arith.addf %331, %332 : vector<8x32xf32>
    %334 = math.tanh %333 : vector<8x32xf32>
    %335 = arith.mulf %330, %334 : vector<8x32xf32>
    %336 = tpu.concatenate %335, %315 in 1 : vector<8x32xf32>, vector<8x32xf32> -> vector<8x64xf32>
    %337 = arith.truncf %336 : vector<8x64xf32> to vector<8x64xbf16>
    %cst_81 = arith.constant dense<0.000000e+00> : vector<8x128xf32>
    %338 = tpu.matmul %337, %19, %cst_81 {dimension_numbers = #tpu.dot_dimension_numbers<[1], [0], [0], [1], [0, 0, 1, 1], [], []>} : vector<8x64xbf16>, vector<64x128xbf16>, vector<8x128xf32> -> vector<8x128xf32>
    %339 = vector.broadcast %20 : vector<1x128xf32> to vector<8x128xf32>
    %340 = arith.addf %338, %339 : vector<8x128xf32>
    %341 = arith.mulf %340, %8 : vector<8x128xf32>
    %342 = math.tanh %341 : vector<8x128xf32>
    %cst_82 = arith.constant 5.000000e-01 : f32
    %343 = vector.broadcast %cst_82 : f32 to vector<8x128xf32>
    %344 = arith.mulf %343, %342 : vector<8x128xf32>
    %cst_83 = arith.constant 5.000000e-01 : f32
    %345 = vector.broadcast %cst_83 : f32 to vector<8x128xf32>
    %346 = arith.addf %344, %345 : vector<8x128xf32>
    %347 = arith.select %5, %342, %346 : vector<8x128xi1>, vector<8x128xf32>
    %348 = vector.extract_strided_slice %347 {offsets = [0, 0], sizes = [8, 32], strides = [1, 1]} : vector<8x128xf32> to vector<8x32xf32>
    %349 = vector.extract_strided_slice %347 {offsets = [0, 32], sizes = [8, 32], strides = [1, 1]} : vector<8x128xf32> to vector<8x32xf32>
    %350 = vector.extract_strided_slice %347 {offsets = [0, 64], sizes = [8, 32], strides = [1, 1]} : vector<8x128xf32> to vector<8x32xf32>
    %351 = vector.extract_strided_slice %347 {offsets = [0, 96], sizes = [8, 32], strides = [1, 1]} : vector<8x128xf32> to vector<8x32xf32>
    %352 = arith.mulf %349, %313 : vector<8x32xf32>
    %353 = arith.mulf %348, %350 : vector<8x32xf32>
    %354 = arith.addf %352, %353 : vector<8x32xf32>
    %355 = math.tanh %354 : vector<8x32xf32>
    %356 = arith.mulf %351, %355 : vector<8x32xf32>
    %357 = arith.truncf %356 : vector<8x32xf32> to vector<8x32xbf16>
    %c0_84 = arith.constant 0 : index
    %c0_85 = arith.constant 0 : index
    %358 = vector.load %arg9[%c0_84, %c0_85] : memref<32x4xbf16, #tpu.memory_space<vmem>>, vector<32x4xbf16>
    %cst_86 = arith.constant dense<0.000000e+00> : vector<8x4xf32>
    %359 = tpu.matmul %357, %358, %cst_86 {dimension_numbers = #tpu.dot_dimension_numbers<[1], [0], [0], [1], [0, 0, 1, 1], [], []>} : vector<8x32xbf16>, vector<32x4xbf16>, vector<8x4xf32> -> vector<8x4xf32>
    %c0_87 = arith.constant 0 : index
    %c0_88 = arith.constant 0 : index
    %360 = vector.load %arg10[%c0_87, %c0_88] : memref<1x4xf32, #tpu.memory_space<vmem>>, vector<1x4xf32>
    %361 = vector.broadcast %360 : vector<1x4xf32> to vector<8x4xf32>
    %362 = arith.addf %359, %361 : vector<8x4xf32>
    %c0_89 = arith.constant 0 : index
    %c0_90 = arith.constant 0 : index
    %363 = vector.load %arg11[%c0_89, %c0_90] : memref<8x4xf32, #tpu.memory_space<vmem>>, vector<8x4xf32>
    tpu.vector_store %arg11[%c0_89, %c0_90], %362 {strides = array<i32>} : memref<8x4xf32, #tpu.memory_space<vmem>>, vector<8x4xf32>,
    return
  }
  func.func @transform_0(%arg0: i32) -> (i32, i32, i32) {
    %c0_i32 = arith.constant 0 : i32
    %c0_i32_0 = arith.constant 0 : i32
    %c0_i32_1 = arith.constant 0 : i32
    return %c0_i32, %arg0, %c0_i32_0 : i32, i32, i32
  }
  func.func @transform_1(%arg0: i32) -> (i32, i32, i32) {
    %c0_i32 = arith.constant 0 : i32
    %c0_i32_0 = arith.constant 0 : i32
    %c0_i32_1 = arith.constant 0 : i32
    return %c0_i32, %arg0, %c0_i32_0 : i32, i32, i32
  }
  func.func @transform_2(%arg0: i32) -> (i32, i32, i32) {
    %c0_i32 = arith.constant 0 : i32
    %c0_i32_0 = arith.constant 0 : i32
    %c0_i32_1 = arith.constant 0 : i32
    return %c0_i32, %arg0, %c0_i32_0 : i32, i32, i32
  }
  func.func @transform_3(%arg0: i32) -> (i32, i32) {
    %c0_i32 = arith.constant 0 : i32
    %c0_i32_0 = arith.constant 0 : i32
    %c0_i32_1 = arith.constant 0 : i32
    return %c0_i32, %c0_i32_0 : i32, i32
  }
  func.func @transform_4(%arg0: i32) -> (i32, i32) {
    %c0_i32 = arith.constant 0 : i32
    %c0_i32_0 = arith.constant 0 : i32
    %c0_i32_1 = arith.constant 0 : i32
    return %c0_i32, %c0_i32_0 : i32, i32
  }
  func.func @transform_5(%arg0: i32) -> (i32, i32) {
    %c0_i32 = arith.constant 0 : i32
    %c0_i32_0 = arith.constant 0 : i32
    %c0_i32_1 = arith.constant 0 : i32
    return %c0_i32, %c0_i32_0 : i32, i32
  }
  func.func @transform_6(%arg0: i32) -> (i32, i32) {
    %c0_i32 = arith.constant 0 : i32
    %c0_i32_0 = arith.constant 0 : i32
    %c0_i32_1 = arith.constant 0 : i32
    return %c0_i32, %c0_i32_0 : i32, i32
  }
  func.func @transform_7(%arg0: i32) -> (i32, i32) {
    %c0_i32 = arith.constant 0 : i32
    %c0_i32_0 = arith.constant 0 : i32
    %c0_i32_1 = arith.constant 0 : i32
    return %c0_i32, %c0_i32_0 : i32, i32
  }
  func.func @transform_8(%arg0: i32) -> (i32, i32) {
    %c0_i32 = arith.constant 0 : i32
    %c0_i32_0 = arith.constant 0 : i32
    %c0_i32_1 = arith.constant 0 : i32
    return %c0_i32, %c0_i32_0 : i32, i32
  }
  func.func @transform_9(%arg0: i32) -> (i32, i32) {
    %c0_i32 = arith.constant 0 : i32
    %c0_i32_0 = arith.constant 0 : i32
    %c0_i32_1 = arith.constant 0 : i32
    return %c0_i32, %c0_i32_0 : i32, i32
  }
  func.func @transform_10(%arg0: i32) -> (i32, i32) {
    %c0_i32 = arith.constant 0 : i32
    %c0_i32_0 = arith.constant 0 : i32
    return %arg0, %c0_i32 : i32, i32
  }
}

</mosaic_0001>

<bundles_post_ra>
// kernel: lstm_model_forward.1
= control target key start
LH: loop header
LB: loop body
LE: loop exit
PB: predicated region body
PF: predicated region fallthrough
CT: control target
= control target key end

     0   :  { %vm72_vm0 = vcmask 1041408   ;;  %vm59_vm1 = vcmask 31744   ;;  %vm146_vm2 = vcmask 261120   ;;  %v36_v9 = vlaneseq  ;;  %s1099_s27 = smov 32   ;;  %s1489_s3 = inlined_call_operand.vmem [shape: bf16[4,128], index: 3, kind: input, shape index: {}]   ;;  %s1490_s4 = inlined_call_operand.vmem [shape: bf16[32,128], index: 4, kind: input, shape index: {}]   ;;  %s1491_s0 = inlined_call_operand.vmem [shape: f32[8,8,4], index: 0, kind: input, shape index: {}]   ;;  %s1492_s1 = inlined_call_operand.vmem [shape: f32[2,8,32], index: 1, kind: input, shape index: {}]   ;;  %s1493_s5 = inlined_call_operand.vmem [shape: f32[1,128], index: 5, kind: input, shape index: {}]   ;;  %s1494_s2 = inlined_call_operand.vmem [shape: f32[2,8,32], index: 2, kind: input, shape index: {}]   ;;  %s1495_s6 = inlined_call_operand.vmem [shape: bf16[64,128], index: 6, kind: input, shape index: {}]   ;;  %s1496_s7 = inlined_call_operand.vmem [shape: f32[1,128], index: 7, kind: input, shape index: {}]   ;;  %s1497_s8 = inlined_call_operand.vmem [shape: bf16[32,4], index: 8, kind: input, shape index: {}]   ;;  %s1498_s9 = inlined_call_operand.vmem [shape: f32[1,4], index: 9, kind: input, shape index: {}]   ;;  %s1499_s10 = inlined_call_operand.vmem [shape: f32[8,4], index: 10, kind: output, shape index: {}]  }
   0x1   :  { %v54_v0 = vld [vmem:[%s1489_s3] sm:$0x3]  ;;  %v1161_v1 = vld [vmem:[%s1490_s4 + $0x8] sm:$0xff]  ;;  %v1097_v15 = vmov 0.5   ;;  %v1217_v33 = vld [vmem:[%s1495_s6 + $0x18] sm:$0xff]  ;;  %vm227_vm6 = vcmask 523264  }
   0x2   :  { %v42_v2 = vld [vmem:[%s1491_s0] sm:$0xff]  ;;  %v74_v3 = vsel %vm72_vm0, %v54_v0, 0  ;;  %v43_v4 = vld [vmem:[%s1491_s0 + $0x8] sm:$0xff]  ;;  %156 = vmatpush.bf16.msra.mxu1 %v1161_v1  ;;  %284 = vmatpush.bf16.msra.mxu3 %v1161_v1  ;;  %v37_v10 = vand.u32 127, %v36_v9  ;;  %v1229_v39 = vld [vmem:[%s1495_s6 + $0x10] sm:$0xff] }
   0x3   :  { %83 = vmatpush.bf16.msra.mxu0 %v74_v3  ;;  %v50_v5 = vpack.c.bf16 %v43_v4, %v42_v2  ;;  %v1173_v6 = vld [vmem:[%s1490_s4] sm:$0xff]  ;;  %235 = vmatpush.bf16.msra.mxu2 %v1217_v33  ;;  %v963_v37 = vld [vmem:[%s1492_s1 + $0x8] sm:$0xff] }
   0x4   :  { %v126_v7 = vld [vmem:[%s1492_s1] sm:$0xff]  ;;  %vm38_vm3 = vcmp.ge.s32.totalorder %v37_v10, 64  ;;  %vm39_vm4 = vcmp.lt.s32.totalorder %v37_v10, 96  ;;  %v1235_v40 = vld [vmem:[%s1495_s6 + $0x8] sm:$0xff] }
   0x5   :  { %v133_v8 = vpack.c.bf16 %v126_v7, %v126_v7  ;;  %v1190_v11 = vld [vmem:[%s1493_s5] ss:$0 sm:$0xff]  ;;  %vm1193_vm5 = vmand %vm38_vm3, %vm39_vm4  ;;  %s1098_s5 = smov 64   ;;  %v964_v63 = vld [vmem:[%s1494_s2 + $0x8] sm:$0xff] }
   0x6   :  { %959 = vmatmul.msk.bf16.vlgmr.msra.gmra.mxu0 %vm59_vm1, %v50_v5  ;;  %157 = vmatpush.bf16.msra.mxu1 %v1173_v6  ;;  %v1199_v16 = vsel %vm1193_vm5, 1.0, %v1097_v15  ;;  %v129_v25 = vld [vmem:[%s1494_s2] sm:$0xff] }
   0x7   :  { %744 = vmatpush.bf16.msrb.mxu0 %v1161_v1  ;;  %285 = vmatpush.bf16.msra.mxu3 %v1173_v6  ;;  %v1243_v41 = vld [vmem:[%s1495_s6] sm:$0xff] }
   0x8   :  { %236 = vmatpush.bf16.msra.mxu2 %v1229_v39  ;;  %v1267_v54 = vld [vmem:[%s1496_s7] ss:$0 sm:$0xff] }
   0x9   :  { %973 = vmatmul.msk.bf16.vlgmr.msra.gmra.mxu1 %vm146_vm2, %v133_v8  ;;  %v1020_v14 = vld [vmem:[%s1497_s8] sm:$0xff] }
   0xa   :  { %331 = vmatpush.bf16.msrb.mxu1 %v1217_v33 }
   0xb   :  { %745 = vmatpush.bf16.msrb.mxu0 %v1173_v6  ;;  %376 = vmatpush.bf16.msrb.mxu3 %v1161_v1 }
   0xc   :  { %237 = vmatpush.bf16.msra.mxu2 %v1235_v40 }
   0xe   :  { %332 = vmatpush.bf16.msrb.mxu1 %v1229_v39 }
   0xf   :  { %377 = vmatpush.bf16.msrb.mxu3 %v1173_v6 }
  0x10   :  { %238 = vmatpush.bf16.msra.mxu2 %v1243_v41 }
  0x12   :  { %333 = vmatpush.bf16.msrb.mxu1 %v1235_v40 }
  0x14   :  { %423 = vmatpush.bf16.msrb.mxu2 %v1217_v33 }
  0x16   :  { %334 = vmatpush.bf16.msrb.mxu1 %v1243_v41 }
  0x18   :  { %424 = vmatpush.bf16.msrb.mxu2 %v1229_v39 }
  0x1a   :  { %468 = vmatpush.bf16.msra.mxu1 %v1161_v1 }
  0x1c   :  { %425 = vmatpush.bf16.msrb.mxu2 %v1235_v40 }
  0x1e   :  { %469 = vmatpush.bf16.msra.mxu1 %v1173_v6 }
  0x20   :  { %426 = vmatpush.bf16.msrb.mxu2 %v1243_v41 }
  0x83   :  { %v85_v12 = vpop.f32.mrf.mxu0 }
  0x84   :  { %v86_v13 = vadd.f32 %v1190_v11, %v85_v12 }
  0x86   :  { %v159_v17 = vpop.f32.mrf.mxu1 }
  0x87   :  { %v163_v18 = vadd.f32 %v159_v17, %v86_v13 }
  0x89   :  { %v164_v19 = vmul.f32 %v163_v18, %v1199_v16 }
  0x8b   :  { %1033 = vtanh.f32 %v164_v19  ;;  %v87_v48 = vpop.f32.mrf.mxu0 }
  0x8c   :  { %v88_v49 = vadd.f32 %v1190_v11, %v87_v48 }
  0x8e   :  { %v161_v20 = vpop.f32.mrf.mxu1 }
  0x91   :  { %v1034_v21 = vpop.eup %1033 }
  0x92   :  { %v166_v22 = vmul.f32 0.5, %v1034_v21 }
  0x94   :  { %v167_v23 = vadd.f32 0.5, %v166_v22 }
  0x96   :  { %v168_v24 = vsel %vm1193_vm5, %v1034_v21, %v167_v23 }
  0x97   :  { %175 = vrot.lane.b32.xlu0 %v168_v24, %s1098_s5 }
  0x9f   :  { %170 = vrot.lane.b32.xlu0 %v129_v25, %s1099_s27 }
 0x109   :  { %v176_v26 = vpop.permute.xlu0 %175 }
 0x10a   :  { %v178_v27 = vmul.f32 %v176_v26, %v168_v24  ;;  %v44_v26 = vld [vmem:[%s1491_s0 + $0x10] sm:$0xff] }
 0x10c   :  { %180 = vrot.lane.b32.xlu1 %v178_v27, %s1099_s27  ;;  %v45_v27 = vld [vmem:[%s1491_s0 + $0x18] sm:$0xff] }
 0x111   :  { %v171_v28 = vpop.permute.xlu0 %170 }
 0x112   :  { %v173_v29 = vmul.f32 %v171_v28, %v168_v24 }
 0x17e   :  { %v181_v30 = vpop.permute.xlu1 %180 }
 0x17f   :  { %v1210_v31 = vadd.f32 %v181_v30, %v173_v29  ;;  %v51_v29 = vpack.c.bf16 %v45_v27, %v44_v26 }
 0x181   :  { %1035 = vtanh.f32 %v1210_v31  ;;  %960 = vmatmul.msk.bf16.gmra.mxu0 %vm59_vm1, %v51_v29 }
 0x187   :  { %v1036_v32 = vpop.eup %1035 }
 0x188   :  { %186 = vrot.lane.b32.xlu1 %v1036_v32, %s1098_s5 }
 0x1fa   :  { %v187_v34 = vpop.permute.xlu1 %186 }
 0x1fb   :  { %v189_v35 = vmul.f32 %v187_v34, %v168_v24 }
 0x1fd   :  { %v271_v36 = vpack.c.bf16 %v189_v35, %v189_v35  ;;  %v1025_v38 = vpack.i.bf16 %v963_v37, %v189_v35 }
 0x1ff   :  { %273 = vrot.lane.b32.xlu2 %v271_v36, %s1099_s27  ;;  %v90_v36 = vpop.f32.mrf.mxu0 }
 0x200   :  { %v91_v37 = vadd.f32 %v1190_v11, %v90_v36 }
 0x207   :  { %1026 = vrot.lane.b32.xlu2 %v1025_v38, %s1099_s27 }
 0x259   :  { %v274_v42 = vpop.permute.xlu2 %273 }
 0x25a   :  { %991 = vmatmul.msk.bf16.vlgmr.msra.gmra.mxu3 %vm146_vm2, %v274_v42 }
 0x25b   :  { %515 = vmatpush.bf16.msra.mxu3 %v1217_v33 }
 0x25f   :  { %516 = vmatpush.bf16.msra.mxu3 %v1229_v39 }
 0x261   :  { %v1027_v43 = vpop.permute.xlu2 %1026 }
 0x262   :  { %v1029_v44 = vunpack.i.h.bf16 %v1027_v43  ;;  %v1028_v45 = vunpack.i.l.bf16 %v1027_v43 }
 0x263   :  { %517 = vmatpush.bf16.msra.mxu3 %v1235_v40 }
 0x264   :  { %v198_v46 = vsel %vm146_vm2, %v1028_v45, %v1029_v44 }
 0x265   :  { %v199_v47 = vpack.c.bf16 %v198_v46, %v198_v46 }
 0x267   :  { %990 = vmatmul.msk.bf16.vlgmr.msra.gmra.mxu2 %vm227_vm6, %v199_v47  ;;  %518 = vmatpush.bf16.msra.mxu3 %v1243_v41 }
 0x268   :  { %560 = vmatpush.bf16.msra.mxu2 %v1161_v1 }
 0x26c   :  { %561 = vmatpush.bf16.msra.mxu2 %v1173_v6 }
 0x2dd   :  { %v287_v50 = vpop.f32.mrf.mxu3 }
 0x2de   :  { %v291_v51 = vadd.f32 %v287_v50, %v88_v49 }
 0x2e0   :  { %v292_v52 = vmul.f32 %v291_v51, %v1199_v16 }
 0x2e2   :  { %1037 = vtanh.f32 %v292_v52 }
 0x2e5   :  { %v289_v53 = vpop.f32.mrf.mxu3 }
 0x2e8   :  { %v1038_v55 = vpop.eup %1037 }
 0x2e9   :  { %v294_v56 = vmul.f32 0.5, %v1038_v55 }
 0x2ea   :  { %v240_v57 = vpop.f32.mrf.mxu2 }
 0x2eb   :  { %v241_v58 = vadd.f32 %v1267_v54, %v240_v57  ;;  %v295_v59 = vadd.f32 0.5, %v294_v56 }
 0x2ed   :  { %v244_v60 = vmul.f32 %v241_v58, %v1199_v16  ;;  %v296_v61 = vsel %vm1193_vm5, %v1038_v55, %v295_v59 }
 0x2ee   :  { %299 = vrot.lane.b32.xlu0 %v296_v61, %s1098_s5  ;;  %v297_v10 = vmul.f32 %v296_v61, %v1210_v31 }
 0x2ef   :  { %1039 = vtanh.f32 %v244_v60 }
 0x2f2   :  { %v242_v62 = vpop.f32.mrf.mxu2 }
 0x2f5   :  { %v1040_v0 = vpop.eup %1039 }
 0x2f6   :  { %250 = vrot.lane.b32.xlu0 %v964_v63, %s1099_s27  ;;  %v246_v2 = vmul.f32 0.5, %v1040_v0 }
 0x2f8   :  { %v247_v3 = vadd.f32 0.5, %v246_v2 }
 0x2fa   :  { %v248_v4 = vsel %vm1193_vm5, %v1040_v0, %v247_v3 }
 0x2fb   :  { %255 = vrot.lane.b32.xlu1 %v248_v4, %s1098_s5 }
 0x360   :  { %v300_v5 = vpop.permute.xlu0 %299 }
 0x361   :  { %v302_v7 = vmul.f32 %v300_v5, %v296_v61 }
 0x363   :  { %304 = vrot.lane.b32.xlu2 %v302_v7, %s1099_s27 }
 0x368   :  { %v251_v17 = vpop.permute.xlu0 %250 }
 0x369   :  { %v253_v18 = vmul.f32 %v251_v17, %v248_v4 }
 0x36d   :  { %v256_v8 = vpop.permute.xlu1 %255 }
 0x36e   :  { %v258_v9 = vmul.f32 %v256_v8, %v248_v4 }
 0x370   :  { %260 = vrot.lane.b32.xlu1 %v258_v9, %s1099_s27 }
 0x3bd   :  { %v305_v12 = vpop.permute.xlu2 %304 }
 0x3be   :  { %v1284_v13 = vadd.f32 %v305_v12, %v297_v10 }
 0x3c0   :  { %1041 = vtanh.f32 %v1284_v13 }
 0x3c6   :  { %v1042_v15 = vpop.eup %1041 }
 0x3c7   :  { %310 = vrot.lane.b32.xlu2 %v1042_v15, %s1098_s5 }
 0x3e2   :  { %v261_v19 = vpop.permute.xlu1 %260 }
 0x3e3   :  { %v1288_v20 = vadd.f32 %v261_v19, %v253_v18 }
 0x3e5   :  { %1043 = vtanh.f32 %v1288_v20 }
 0x3eb   :  { %v1044_v21 = vpop.eup %1043 }
 0x3ec   :  { %266 = vrot.lane.b32.xlu0 %v1044_v21, %s1098_s5  ;;  %v92_v21 = vpop.f32.mrf.mxu0 }
 0x421   :  { %v311_v22 = vpop.permute.xlu2 %310 }
 0x422   :  { %v313_v23 = vmul.f32 %v311_v22, %v296_v61  ;;  %v93_v22 = vadd.f32 %v1190_v11, %v92_v21 }
 0x424   :  { %v363_v24 = vpack.c.bf16 %v313_v23, %v313_v23  ;;  %315 = vrot.lane.b32.xlu2 %v313_v23, %s1099_s27 }
 0x426   :  { %365 = vrot.lane.b32.xlu1 %v363_v24, %s1099_s27 }
 0x45e   :  { %v267_v25 = vpop.permute.xlu0 %266 }
 0x45f   :  { %v269_v28 = vmul.f32 %v267_v25, %v248_v4 }
 0x461   :  { %319 = vrot.lane.b32.xlu0 %v269_v28, %s1098_s5 }
 0x47e   :  { %v316_v31 = vpop.permute.xlu2 %315 }
 0x498   :  { %v366_v30 = vpop.permute.xlu1 %365 }
 0x499   :  { %993 = vmatmul.msk.bf16.vlgmr.msrb.gmra.mxu3 %vm146_vm2, %v366_v30 }
 0x49a   :  { %652 = vmatpush.bf16.msrb.mxu3 %v1161_v1 }
 0x49e   :  { %653 = vmatpush.bf16.msrb.mxu3 %v1173_v6 }
 0x4d3   :  { %v320_v32 = vpop.permute.xlu0 %319 }
 0x4d4   :  { %v322_v34 = vsel %vm146_vm2, %v316_v31, %v320_v32 }
 0x4d5   :  { %v323_v35 = vpack.c.bf16 %v322_v34, %v322_v34 }
 0x4d7   :  { %992 = vmatmul.msk.bf16.vlgmr.msrb.gmra.mxu1 %vm227_vm6, %v323_v35 }
 0x4d8   :  { %607 = vmatpush.bf16.msrb.mxu1 %v1217_v33 }
 0x4dc   :  { %608 = vmatpush.bf16.msrb.mxu1 %v1229_v39 }
 0x4e0   :  { %609 = vmatpush.bf16.msrb.mxu1 %v1235_v40 }
 0x4e4   :  { %610 = vmatpush.bf16.msrb.mxu1 %v1243_v41 }
 0x51c   :  { %v379_v38 = vpop.f32.mrf.mxu3 }
 0x51d   :  { %v383_v42 = vadd.f32 %v379_v38, %v91_v37 }
 0x51f   :  { %v384_v43 = vmul.f32 %v383_v42, %v1199_v16 }
 0x521   :  { %1045 = vtanh.f32 %v384_v43 }
 0x524   :  { %v381_v44 = vpop.f32.mrf.mxu3 }
 0x527   :  { %v1046_v45 = vpop.eup %1045 }
 0x528   :  { %v386_v46 = vmul.f32 0.5, %v1046_v45 }
 0x52a   :  { %v387_v47 = vadd.f32 0.5, %v386_v46 }
 0x52c   :  { %v388_v48 = vsel %vm1193_vm5, %v1046_v45, %v387_v47 }
 0x52d   :  { %391 = vrot.lane.b32.xlu2 %v388_v48, %s1098_s5  ;;  %v389_v62 = vmul.f32 %v388_v48, %v1284_v13 }
 0x554   :  { %v336_v49 = vpop.f32.mrf.mxu1 }
 0x555   :  { %v337_v50 = vadd.f32 %v1267_v54, %v336_v49 }
 0x557   :  { %v340_v51 = vmul.f32 %v337_v50, %v1199_v16 }
 0x559   :  { %1047 = vtanh.f32 %v340_v51 }
 0x55c   :  { %v338_v52 = vpop.f32.mrf.mxu1 }
 0x55f   :  { %v1048_v53 = vpop.eup %1047 }
 0x560   :  { %v342_v55 = vmul.f32 0.5, %v1048_v53 }
 0x562   :  { %v343_v56 = vadd.f32 0.5, %v342_v55 }
 0x564   :  { %v344_v57 = vsel %vm1193_vm5, %v1048_v53, %v343_v56 }
 0x565   :  { %347 = vrot.lane.b32.xlu1 %v344_v57, %s1098_s5  ;;  %v345_v3 = vmul.f32 %v344_v57, %v1288_v20 }
 0x587   :  { %v392_v58 = vpop.permute.xlu2 %391 }
 0x588   :  { %v394_v59 = vmul.f32 %v392_v58, %v388_v48 }
 0x58a   :  { %396 = vrot.lane.b32.xlu1 %v394_v59, %s1099_s27 }
 0x5d7   :  { %v348_v60 = vpop.permute.xlu1 %347 }
 0x5d8   :  { %v350_v61 = vmul.f32 %v348_v60, %v344_v57 }
 0x5da   :  { %352 = vrot.lane.b32.xlu0 %v350_v61, %s1099_s27  ;;  %v46_v61 = vld [vmem:[%s1491_s0 + $0x20] sm:$0xff] }
 0x5fc   :  { %v397_v63 = vpop.permute.xlu1 %396 }
 0x5fd   :  { %v399_v0 = vadd.f32 %v397_v63, %v389_v62  ;;  %v47_v62 = vld [vmem:[%s1491_s0 + $0x28] sm:$0xff] }
 0x5fe   :  { %v52_v63 = vpack.c.bf16 %v47_v62, %v46_v61 }
 0x5ff   :  { %1049 = vtanh.f32 %v399_v0 }
 0x600   :  { %961 = vmatmul.msk.bf16.gmra.mxu0 %vm59_vm1, %v52_v63 }
 0x605   :  { %v1050_v2 = vpop.eup %1049 }
 0x606   :  { %402 = vrot.lane.b32.xlu0 %v1050_v2, %s1098_s5 }
 0x64c   :  { %v353_v4 = vpop.permute.xlu0 %352 }
 0x64d   :  { %v355_v5 = vadd.f32 %v353_v4, %v345_v3 }
 0x64f   :  { %1051 = vtanh.f32 %v355_v5 }
 0x655   :  { %v1052_v7 = vpop.eup %1051 }
 0x656   :  { %358 = vrot.lane.b32.xlu2 %v1052_v7, %s1098_s5 }
 0x678   :  { %v403_v8 = vpop.permute.xlu0 %402 }
 0x679   :  { %v405_v9 = vmul.f32 %v403_v8, %v388_v48 }
 0x67b   :  { %v455_v10 = vpack.c.bf16 %v405_v9, %v405_v9  ;;  %407 = vrot.lane.b32.xlu1 %v405_v9, %s1099_s27 }
 0x67d   :  { %457 = vrot.lane.b32.xlu0 %v455_v10, %s1099_s27  ;;  %v95_v7 = vpop.f32.mrf.mxu0 }
 0x6b0   :  { %v359_v12 = vpop.permute.xlu2 %358 }
 0x6b1   :  { %v361_v13 = vmul.f32 %v359_v12, %v344_v57 }
 0x6b3   :  { %411 = vrot.lane.b32.xlu2 %v361_v13, %s1098_s5 }
 0x6ed   :  { %v408_v17 = vpop.permute.xlu1 %407 }
 0x6ef   :  { %v458_v15 = vpop.permute.xlu0 %457 }
 0x6f0   :  { %995 = vmatmul.msk.bf16.vlgmr.msra.gmra.mxu1 %vm146_vm2, %v458_v15 }
 0x6f1   :  { %791 = vmatpush.bf16.msra.mxu1 %v1217_v33 }
 0x6f5   :  { %792 = vmatpush.bf16.msra.mxu1 %v1229_v39 }
 0x6f9   :  { %793 = vmatpush.bf16.msra.mxu1 %v1235_v40 }
 0x6fd   :  { %794 = vmatpush.bf16.msra.mxu1 %v1243_v41 }
 0x70d   :  { %v412_v18 = vpop.permute.xlu2 %411 }
 0x70e   :  { %v414_v19 = vsel %vm146_vm2, %v408_v17, %v412_v18 }
 0x70f   :  { %v415_v20 = vpack.c.bf16 %v414_v19, %v414_v19 }
 0x711   :  { %994 = vmatmul.msk.bf16.vlgmr.msrb.gmra.mxu2 %vm227_vm6, %v415_v20 }
 0x712   :  { %699 = vmatpush.bf16.msrb.mxu2 %v1217_v33 }
 0x716   :  { %700 = vmatpush.bf16.msrb.mxu2 %v1229_v39 }
 0x71a   :  { %701 = vmatpush.bf16.msrb.mxu2 %v1235_v40 }
 0x71e   :  { %702 = vmatpush.bf16.msrb.mxu2 %v1243_v41 }
 0x76d   :  { %v471_v23 = vpop.f32.mrf.mxu1 }
 0x76e   :  { %v475_v24 = vadd.f32 %v471_v23, %v93_v22 }
 0x770   :  { %v476_v25 = vmul.f32 %v475_v24, %v1199_v16 }
 0x772   :  { %1053 = vtanh.f32 %v476_v25 }
 0x775   :  { %v473_v26 = vpop.f32.mrf.mxu1 }
 0x778   :  { %v1054_v27 = vpop.eup %1053 }
 0x779   :  { %v478_v28 = vmul.f32 0.5, %v1054_v27 }
 0x77b   :  { %v479_v29 = vadd.f32 0.5, %v478_v28 }
 0x77d   :  { %v480_v30 = vsel %vm1193_vm5, %v1054_v27, %v479_v29 }
 0x77e   :  { %483 = vrot.lane.b32.xlu1 %v480_v30, %s1098_s5  ;;  %v481_v47 = vmul.f32 %v480_v30, %v399_v0 }
 0x794   :  { %v428_v31 = vpop.f32.mrf.mxu2 }
 0x795   :  { %v429_v32 = vadd.f32 %v1267_v54, %v428_v31 }
 0x797   :  { %v432_v34 = vmul.f32 %v429_v32, %v1199_v16 }
 0x799   :  { %1055 = vtanh.f32 %v432_v34 }
 0x79c   :  { %v430_v35 = vpop.f32.mrf.mxu2 }
 0x79f   :  { %v1056_v36 = vpop.eup %1055 }
 0x7a0   :  { %v434_v37 = vmul.f32 0.5, %v1056_v36 }
 0x7a2   :  { %v435_v38 = vadd.f32 0.5, %v434_v37 }
 0x7a4   :  { %v436_v42 = vsel %vm1193_vm5, %v1056_v36, %v435_v38 }
 0x7a5   :  { %439 = vrot.lane.b32.xlu2 %v436_v42, %s1098_s5  ;;  %v437_v51 = vmul.f32 %v436_v42, %v355_v5 }
 0x7f0   :  { %v484_v43 = vpop.permute.xlu1 %483 }
 0x7f1   :  { %v486_v44 = vmul.f32 %v484_v43, %v480_v30 }
 0x7f3   :  { %488 = vrot.lane.b32.xlu0 %v486_v44, %s1099_s27 }
 0x7ff   :  { %v440_v45 = vpop.permute.xlu2 %439 }
 0x800   :  { %v442_v46 = vmul.f32 %v440_v45, %v436_v42 }
 0x802   :  { %444 = vrot.lane.b32.xlu1 %v442_v46, %s1099_s27 }
 0x865   :  { %v489_v48 = vpop.permute.xlu0 %488 }
 0x866   :  { %v1353_v49 = vadd.f32 %v489_v48, %v481_v47  ;;  %v97_v48 = vpop.f32.mrf.mxu0 }
 0x868   :  { %1057 = vtanh.f32 %v1353_v49 }
 0x86e   :  { %v1058_v50 = vpop.eup %1057 }
 0x86f   :  { %494 = vrot.lane.b32.xlu2 %v1058_v50, %s1098_s5 }
 0x874   :  { %v445_v52 = vpop.permute.xlu1 %444 }
 0x875   :  { %v1357_v53 = vadd.f32 %v445_v52, %v437_v51 }
 0x877   :  { %1059 = vtanh.f32 %v1357_v53 }
 0x87d   :  { %v1060_v55 = vpop.eup %1059 }
 0x87e   :  { %450 = vrot.lane.b32.xlu0 %v1060_v55, %s1098_s5 }
 0x8c9   :  { %v495_v56 = vpop.permute.xlu2 %494 }
 0x8ca   :  { %v497_v57 = vmul.f32 %v495_v56, %v480_v30 }
 0x8cc   :  { %v547_v58 = vpack.c.bf16 %v497_v57, %v497_v57  ;;  %499 = vrot.lane.b32.xlu2 %v497_v57, %s1099_s27 }
 0x8ce   :  { %549 = vrot.lane.b32.xlu1 %v547_v58, %s1099_s27 }
 0x8f0   :  { %v451_v59 = vpop.permute.xlu0 %450 }
 0x8f1   :  { %v453_v60 = vmul.f32 %v451_v59, %v436_v42 }
 0x8f3   :  { %503 = vrot.lane.b32.xlu0 %v453_v60, %s1098_s5 }
 0x926   :  { %v500_v2 = vpop.permute.xlu2 %499 }
 0x940   :  { %v550_v0 = vpop.permute.xlu1 %549 }
 0x941   :  { %997 = vmatmul.msk.bf16.vlgmr.msra.gmra.mxu2 %vm146_vm2, %v550_v0 }
 0x942   :  { %883 = vmatpush.bf16.msra.mxu2 %v1217_v33  ;;  %v96_v33 = vadd.f32 %v1190_v11, %v95_v7 }
 0x946   :  { %884 = vmatpush.bf16.msra.mxu2 %v1229_v39 }
 0x94a   :  { %885 = vmatpush.bf16.msra.mxu2 %v1235_v40 }
 0x94e   :  { %886 = vmatpush.bf16.msra.mxu2 %v1243_v41 }
 0x965   :  { %v504_v3 = vpop.permute.xlu0 %503 }
 0x966   :  { %v506_v4 = vsel %vm146_vm2, %v500_v2, %v504_v3 }
 0x967   :  { %v507_v5 = vpack.c.bf16 %v506_v4, %v506_v4 }
 0x969   :  { %996 = vmatmul.msk.bf16.vlgmr.msra.gmra.mxu3 %vm227_vm6, %v507_v5 }
 0x96a   :  { %836 = vmatpush.bf16.msra.mxu3 %v1161_v1 }
 0x96e   :  { %837 = vmatpush.bf16.msra.mxu3 %v1173_v6 }
 0x9c4   :  { %v563_v8 = vpop.f32.mrf.mxu2 }
 0x9c5   :  { %v567_v39 = vadd.f32 %v563_v8, %v96_v33 }
 0x9c7   :  { %v568_v40 = vmul.f32 %v567_v39, %v1199_v16 }
 0x9c9   :  { %1061 = vtanh.f32 %v568_v40 }
 0x9cc   :  { %v565_v41 = vpop.f32.mrf.mxu2 }
 0x9cf   :  { %v1062_v9 = vpop.eup %1061 }
 0x9d0   :  { %v570_v10 = vmul.f32 0.5, %v1062_v9 }
 0x9d2   :  { %v571_v12 = vadd.f32 0.5, %v570_v10 }
 0x9d4   :  { %v572_v13 = vsel %vm1193_vm5, %v1062_v9, %v571_v12 }
 0x9d5   :  { %575 = vrot.lane.b32.xlu1 %v572_v13, %s1098_s5  ;;  %v573_v26 = vmul.f32 %v572_v13, %v1353_v49  ;;  %v98_v49 = vadd.f32 %v1190_v11, %v97_v48 }
 0x9ec   :  { %v520_v1 = vpop.f32.mrf.mxu3 }
 0x9ed   :  { %v521_v6 = vadd.f32 %v1267_v54, %v520_v1 }
 0x9ef   :  { %v524_v15 = vmul.f32 %v521_v6, %v1199_v16 }
 0x9f1   :  { %1063 = vtanh.f32 %v524_v15 }
 0x9f4   :  { %v522_v17 = vpop.f32.mrf.mxu3 }
 0x9f5   :  { %v48_v17 = vld [vmem:[%s1491_s0 + $0x30] sm:$0xff] }
 0x9f7   :  { %v1064_v18 = vpop.eup %1063 }
 0x9f8   :  { %v526_v19 = vmul.f32 0.5, %v1064_v18 }
 0x9fa   :  { %v527_v20 = vadd.f32 0.5, %v526_v19 }
 0x9fc   :  { %v528_v21 = vsel %vm1193_vm5, %v1064_v18, %v527_v20  ;;  %v49_v18 = vld [vmem:[%s1491_s0 + $0x38] sm:$0xff] }
 0x9fd   :  { %531 = vrot.lane.b32.xlu2 %v528_v21, %s1098_s5  ;;  %v529_v30 = vmul.f32 %v528_v21, %v1357_v53  ;;  %v53_v19 = vpack.c.bf16 %v49_v18, %v48_v17 }
 0x9ff   :  { %962 = vmatmul.msk.bf16.gmra.mxu0 %vm59_vm1, %v53_v19 }
 0xa47   :  { %v576_v22 = vpop.permute.xlu1 %575 }
 0xa48   :  { %v578_v23 = vmul.f32 %v576_v22, %v572_v13 }
 0xa4a   :  { %580 = vrot.lane.b32.xlu0 %v578_v23, %s1099_s27 }
 0xa57   :  { %v532_v24 = vpop.permute.xlu2 %531 }
 0xa58   :  { %v534_v25 = vmul.f32 %v532_v24, %v528_v21 }
 0xa5a   :  { %536 = vrot.lane.b32.xlu1 %v534_v25, %s1099_s27 }
 0xabc   :  { %v581_v27 = vpop.permute.xlu0 %580 }
 0xabd   :  { %v583_v28 = vadd.f32 %v581_v27, %v573_v26  ;;  %v100_v27 = vpop.f32.mrf.mxu0 }
 0xabf   :  { %1065 = vtanh.f32 %v583_v28 }
 0xac5   :  { %v1066_v29 = vpop.eup %1065 }
 0xac6   :  { %586 = vrot.lane.b32.xlu2 %v1066_v29, %s1098_s5  ;;  %v101_v29 = vadd.f32 %v1190_v11, %v100_v27 }
 0xacc   :  { %v537_v31 = vpop.permute.xlu1 %536 }
 0xacd   :  { %v539_v32 = vadd.f32 %v537_v31, %v529_v30 }
 0xacf   :  { %1067 = vtanh.f32 %v539_v32 }
 0xad5   :  { %v1068_v34 = vpop.eup %1067 }
 0xad6   :  { %542 = vrot.lane.b32.xlu0 %v1068_v34, %s1098_s5 }
 0xb20   :  { %v587_v35 = vpop.permute.xlu2 %586 }
 0xb21   :  { %v589_v36 = vmul.f32 %v587_v35, %v572_v13 }
 0xb23   :  { %v639_v37 = vpack.c.bf16 %v589_v36, %v589_v36  ;;  %591 = vrot.lane.b32.xlu2 %v589_v36, %s1099_s27 }
 0xb25   :  { %641 = vrot.lane.b32.xlu1 %v639_v37, %s1099_s27 }
 0xb48   :  { %v543_v38 = vpop.permute.xlu0 %542 }
 0xb49   :  { %v545_v42 = vmul.f32 %v543_v38, %v528_v21 }
 0xb4b   :  { %595 = vrot.lane.b32.xlu0 %v545_v42, %s1098_s5 }
 0xb7d   :  { %v592_v44 = vpop.permute.xlu2 %591 }
 0xb97   :  { %v642_v43 = vpop.permute.xlu1 %641 }
 0xb98   :  { %999 = vmatmul.msk.bf16.vlgmr.msrb.gmra.mxu3 %vm146_vm2, %v642_v43 }
 0xbbd   :  { %v596_v45 = vpop.permute.xlu0 %595 }
 0xbbe   :  { %v598_v46 = vsel %vm146_vm2, %v592_v44, %v596_v45 }
 0xbbf   :  { %v599_v47 = vpack.c.bf16 %v598_v46, %v598_v46 }
 0xbc1   :  { %998 = vmatmul.msk.bf16.vlgmr.msrb.gmra.mxu1 %vm227_vm6, %v599_v47 }
 0xc1b   :  { %v655_v50 = vpop.f32.mrf.mxu3 }
 0xc1c   :  { %v659_v51 = vadd.f32 %v655_v50, %v98_v49 }
 0xc1e   :  { %v660_v52 = vmul.f32 %v659_v51, %v1199_v16 }
 0xc20   :  { %1069 = vtanh.f32 %v660_v52 }
 0xc23   :  { %v657_v53 = vpop.f32.mrf.mxu3 }
 0xc26   :  { %v1070_v55 = vpop.eup %1069 }
 0xc27   :  { %v662_v56 = vmul.f32 0.5, %v1070_v55 }
 0xc29   :  { %v663_v57 = vadd.f32 0.5, %v662_v56 }
 0xc2b   :  { %v664_v58 = vsel %vm1193_vm5, %v1070_v55, %v663_v57 }
 0xc2c   :  { %667 = vrot.lane.b32.xlu2 %v664_v58, %s1098_s5  ;;  %v665_v8 = vmul.f32 %v664_v58, %v583_v28  ;;  %v102_v28 = vpop.f32.mrf.mxu0 }
 0xc3e   :  { %v612_v59 = vpop.f32.mrf.mxu1 }
 0xc3f   :  { %v613_v60 = vadd.f32 %v1267_v54, %v612_v59 }
 0xc41   :  { %v616_v61 = vmul.f32 %v613_v60, %v1199_v16 }
 0xc43   :  { %1071 = vtanh.f32 %v616_v61 }
 0xc46   :  { %v614_v62 = vpop.f32.mrf.mxu1 }
 0xc49   :  { %v1072_v63 = vpop.eup %1071 }
 0xc4a   :  { %v618_v0 = vmul.f32 0.5, %v1072_v63 }
 0xc4c   :  { %v619_v2 = vadd.f32 0.5, %v618_v0 }
 0xc4e   :  { %v620_v3 = vsel %vm1193_vm5, %v1072_v63, %v619_v2 }
 0xc4f   :  { %623 = vrot.lane.b32.xlu1 %v620_v3, %s1098_s5  ;;  %v621_v9 = vmul.f32 %v620_v3, %v539_v32 }
 0xc86   :  { %v668_v4 = vpop.permute.xlu2 %667 }
 0xc87   :  { %v670_v5 = vmul.f32 %v668_v4, %v664_v58 }
 0xc89   :  { %672 = vrot.lane.b32.xlu1 %v670_v5, %s1099_s27 }
 0xcc1   :  { %v624_v7 = vpop.permute.xlu1 %623 }
 0xcc2   :  { %v626_v33 = vmul.f32 %v624_v7, %v620_v3 }
 0xcc4   :  { %628 = vrot.lane.b32.xlu0 %v626_v33, %s1099_s27 }
 0xcfb   :  { %v673_v39 = vpop.permute.xlu1 %672 }
 0xcfc   :  { %v675_v40 = vadd.f32 %v673_v39, %v665_v8 }
 0xcfe   :  { %1073 = vtanh.f32 %v675_v40 }
 0xd04   :  { %v1074_v41 = vpop.eup %1073 }
 0xd05   :  { %678 = vrot.lane.b32.xlu0 %v1074_v41, %s1098_s5 }
 0xd36   :  { %v629_v10 = vpop.permute.xlu0 %628 }
 0xd37   :  { %v631_v12 = vadd.f32 %v629_v10, %v621_v9 }
 0xd39   :  { %1075 = vtanh.f32 %v631_v12 }
 0xd3f   :  { %v1076_v13 = vpop.eup %1075 }
 0xd40   :  { %634 = vrot.lane.b32.xlu2 %v1076_v13, %s1098_s5 }
 0xd77   :  { %v679_v1 = vpop.permute.xlu0 %678 }
 0xd78   :  { %v681_v6 = vmul.f32 %v679_v1, %v664_v58 }
 0xd7a   :  { %v731_v15 = vpack.c.bf16 %v681_v6, %v681_v6  ;;  %683 = vrot.lane.b32.xlu1 %v681_v6, %s1099_s27 }
 0xd7c   :  { %733 = vrot.lane.b32.xlu0 %v731_v15, %s1099_s27 }
 0xd9a   :  { %v635_v20 = vpop.permute.xlu2 %634 }
 0xd9b   :  { %v637_v21 = vmul.f32 %v635_v20, %v620_v3 }
 0xd9d   :  { %687 = vrot.lane.b32.xlu2 %v637_v21, %s1098_s5 }
 0xdec   :  { %v684_v23 = vpop.permute.xlu1 %683 }
 0xdee   :  { %v734_v22 = vpop.permute.xlu0 %733 }
 0xdef   :  { %1001 = vmatmul.msk.bf16.vlgmr.msrb.gmra.mxu0 %vm146_vm2, %v734_v22 }
 0xdf7   :  { %v688_v24 = vpop.permute.xlu2 %687 }
 0xdf8   :  { %v690_v25 = vsel %vm146_vm2, %v684_v23, %v688_v24 }
 0xdf9   :  { %v691_v26 = vpack.c.bf16 %v690_v25, %v690_v25 }
 0xdfb   :  { %1000 = vmatmul.msk.bf16.vlgmr.msrb.gmra.mxu2 %vm227_vm6, %v691_v26 }
 0xe6c   :  { %v747_v30 = vpop.f32.mrf.mxu0 }
 0xe6d   :  { %v751_v31 = vadd.f32 %v747_v30, %v101_v29 }
 0xe6f   :  { %v752_v32 = vmul.f32 %v751_v31, %v1199_v16 }
 0xe71   :  { %1077 = vtanh.f32 %v752_v32 }
 0xe74   :  { %v749_v34 = vpop.f32.mrf.mxu0 }
 0xe77   :  { %v1078_v35 = vpop.eup %1077 }
 0xe78   :  { %v754_v36 = vmul.f32 0.5, %v1078_v35 }
 0xe7a   :  { %v755_v37 = vadd.f32 0.5, %v754_v36 }
 0xe7c   :  { %v756_v38 = vsel %vm1193_vm5, %v1078_v35, %v755_v37 }
 0xe7d   :  { %759 = vrot.lane.b32.xlu1 %v756_v38, %s1098_s5  ;;  %v757_v58 = vmul.f32 %v756_v38, %v675_v40  ;;  %v103_v40 = vadd.f32 %v1190_v11, %v102_v28 }
 0xe7e   :  { %v704_v42 = vpop.f32.mrf.mxu2 }
 0xe7f   :  { %v705_v43 = vadd.f32 %v1267_v54, %v704_v42 }
 0xe81   :  { %v708_v44 = vmul.f32 %v705_v43, %v1199_v16 }
 0xe83   :  { %1079 = vtanh.f32 %v708_v44 }
 0xe86   :  { %v706_v45 = vpop.f32.mrf.mxu2 }
 0xe89   :  { %v1080_v46 = vpop.eup %1079 }
 0xe8a   :  { %v710_v47 = vmul.f32 0.5, %v1080_v46 }
 0xe8c   :  { %v711_v48 = vadd.f32 0.5, %v710_v47 }
 0xe8e   :  { %v712_v49 = vsel %vm1193_vm5, %v1080_v46, %v711_v48 }
 0xe8f   :  { %715 = vrot.lane.b32.xlu2 %v712_v49, %s1098_s5  ;;  %v713_v55 = vmul.f32 %v712_v49, %v631_v12 }
 0xee9   :  { %v716_v50 = vpop.permute.xlu2 %715 }
 0xeea   :  { %v718_v51 = vmul.f32 %v716_v50, %v712_v49 }
 0xeec   :  { %720 = vrot.lane.b32.xlu1 %v718_v51, %s1099_s27 }
 0xeef   :  { %v760_v52 = vpop.permute.xlu1 %759 }
 0xef0   :  { %v762_v53 = vmul.f32 %v760_v52, %v756_v38 }
 0xef2   :  { %764 = vrot.lane.b32.xlu0 %v762_v53, %s1099_s27 }
 0xf5e   :  { %v721_v56 = vpop.permute.xlu1 %720 }
 0xf5f   :  { %v723_v57 = vadd.f32 %v721_v56, %v713_v55 }
 0xf61   :  { %1081 = vtanh.f32 %v723_v57 }
 0xf64   :  { %v765_v59 = vpop.permute.xlu0 %764 }
 0xf65   :  { %v767_v60 = vadd.f32 %v765_v59, %v757_v58 }
 0xf67   :  { %v1082_v61 = vpop.eup %1081  ;;  %1083 = vtanh.f32 %v767_v60 }
 0xf68   :  { %726 = vrot.lane.b32.xlu0 %v1082_v61, %s1098_s5 }
 0xf6d   :  { %v1084_v62 = vpop.eup %1083 }
 0xf6e   :  { %770 = vrot.lane.b32.xlu2 %v1084_v62, %s1098_s5 }
 0xfc8   :  { %v771_v63 = vpop.permute.xlu2 %770 }
 0xfc9   :  { %v773_v0 = vmul.f32 %v771_v63, %v756_v38 }
 0xfcb   :  { %v823_v2 = vpack.c.bf16 %v773_v0, %v773_v0  ;;  %775 = vrot.lane.b32.xlu2 %v773_v0, %s1099_s27 }
 0xfcd   :  { %825 = vrot.lane.b32.xlu1 %v823_v2, %s1099_s27 }
 0xfda   :  { %v727_v3 = vpop.permute.xlu0 %726 }
 0xfdb   :  { %v729_v4 = vmul.f32 %v727_v3, %v712_v49  ;;  %v1032_v3 = vld [vmem:[%s1498_s9] ss:$0 sm:$0xff] }
 0xfdd   :  { %779 = vrot.lane.b32.xlu0 %v729_v4, %s1098_s5 }
0x1025   :  { %v776_v7 = vpop.permute.xlu2 %775 }
0x103f   :  { %v826_v5 = vpop.permute.xlu1 %825 }
0x1040   :  { %1003 = vmatmul.msk.bf16.vlgmr.msra.gmra.mxu3 %vm146_vm2, %v826_v5 }
0x104f   :  { %v780_v33 = vpop.permute.xlu0 %779 }
0x1050   :  { %v782_v8 = vsel %vm146_vm2, %v776_v7, %v780_v33 }
0x1051   :  { %v783_v39 = vpack.c.bf16 %v782_v8, %v782_v8 }
0x1053   :  { %1002 = vmatmul.msk.bf16.vlgmr.msra.gmra.mxu1 %vm227_vm6, %v783_v39 }
0x10c3   :  { %v839_v41 = vpop.f32.mrf.mxu3 }
0x10c4   :  { %v843_v9 = vadd.f32 %v839_v41, %v103_v40 }
0x10c6   :  { %v844_v10 = vmul.f32 %v843_v9, %v1199_v16 }
0x10c8   :  { %1085 = vtanh.f32 %v844_v10 }
0x10cb   :  { %v841_v12 = vpop.f32.mrf.mxu3 }
0x10ce   :  { %v1086_v13 = vpop.eup %1085 }
0x10cf   :  { %v846_v1 = vmul.f32 0.5, %v1086_v13 }
0x10d0   :  { %v796_v6 = vpop.f32.mrf.mxu1 }
0x10d1   :  { %v797_v15 = vadd.f32 %v1267_v54, %v796_v6  ;;  %v847_v17 = vadd.f32 0.5, %v846_v1 }
0x10d3   :  { %v800_v18 = vmul.f32 %v797_v15, %v1199_v16  ;;  %v848_v19 = vsel %vm1193_vm5, %v1086_v13, %v847_v17 }
0x10d4   :  { %851 = vrot.lane.b32.xlu2 %v848_v19, %s1098_s5  ;;  %v849_v28 = vmul.f32 %v848_v19, %v767_v60 }
0x10d5   :  { %1087 = vtanh.f32 %v800_v18 }
0x10d8   :  { %v798_v11 = vpop.f32.mrf.mxu1 }
0x10db   :  { %v1088_v20 = vpop.eup %1087 }
0x10dc   :  { %v802_v21 = vmul.f32 0.5, %v1088_v20 }
0x10de   :  { %v803_v22 = vadd.f32 0.5, %v802_v21 }
0x10e0   :  { %v804_v23 = vsel %vm1193_vm5, %v1088_v20, %v803_v22 }
0x10e1   :  { %807 = vrot.lane.b32.xlu1 %v804_v23, %s1098_s5  ;;  %v805_v32 = vmul.f32 %v804_v23, %v723_v57 }
0x112e   :  { %v852_v24 = vpop.permute.xlu2 %851 }
0x112f   :  { %v854_v25 = vmul.f32 %v852_v24, %v848_v19 }
0x1131   :  { %856 = vrot.lane.b32.xlu1 %v854_v25, %s1099_s27 }
0x1153   :  { %v808_v26 = vpop.permute.xlu1 %807 }
0x1154   :  { %v810_v27 = vmul.f32 %v808_v26, %v804_v23 }
0x1156   :  { %812 = vrot.lane.b32.xlu0 %v810_v27, %s1099_s27 }
0x11a3   :  { %v857_v29 = vpop.permute.xlu1 %856 }
0x11a4   :  { %v859_v30 = vadd.f32 %v857_v29, %v849_v28 }
0x11a6   :  { %1089 = vtanh.f32 %v859_v30 }
0x11ac   :  { %v1090_v31 = vpop.eup %1089 }
0x11ad   :  { %862 = vrot.lane.b32.xlu0 %v1090_v31, %s1098_s5 }
0x11c8   :  { %v813_v34 = vpop.permute.xlu0 %812 }
0x11c9   :  { %v815_v35 = vadd.f32 %v813_v34, %v805_v32 }
0x11cb   :  { %1091 = vtanh.f32 %v815_v35 }
0x11d1   :  { %v1092_v36 = vpop.eup %1091 }
0x11d2   :  { %818 = vrot.lane.b32.xlu2 %v1092_v36, %s1098_s5 }
0x121f   :  { %v863_v37 = vpop.permute.xlu0 %862 }
0x1220   :  { %v865_v38 = vmul.f32 %v863_v37, %v848_v19 }
0x1222   :  { %867 = vrot.lane.b32.xlu1 %v865_v38, %s1099_s27 }
0x122c   :  { %v819_v42 = vpop.permute.xlu2 %818 }
0x122d   :  { %v821_v43 = vmul.f32 %v819_v42, %v804_v23 }
0x122f   :  { %871 = vrot.lane.b32.xlu2 %v821_v43, %s1098_s5 }
0x1289   :  { %v872_v44 = vpop.permute.xlu2 %871 }
0x1294   :  { %v868_v45 = vpop.permute.xlu1 %867 }
0x1295   :  { %v874_v46 = vsel %vm146_vm2, %v868_v45, %v872_v44 }
0x1296   :  { %v875_v47 = vpack.c.bf16 %v874_v46, %v874_v46 }
0x1298   :  { %1004 = vmatmul.msk.bf16.vlgmr.msra.gmra.mxu2 %vm227_vm6, %v875_v47 }
0x131b   :  { %v888_v48 = vpop.f32.mrf.mxu2 }
0x131c   :  { %v889_v49 = vadd.f32 %v1267_v54, %v888_v48 }
0x131e   :  { %v892_v50 = vmul.f32 %v889_v49, %v1199_v16  ;;  %v1021_v16 = vld [vmem:[%s1497_s8 + $0x8] sm:$0xff] }
0x131f   :  { %947 = vmatpush.bf16.msra.mxu0 %v1021_v16 }
0x1320   :  { %1093 = vtanh.f32 %v892_v50 }
0x1323   :  { %v890_v51 = vpop.f32.mrf.mxu2  ;;  %948 = vmatpush.bf16.msra.mxu0 %v1020_v14 }
0x1326   :  { %v1094_v52 = vpop.eup %1093 }
0x1327   :  { %v894_v53 = vmul.f32 0.5, %v1094_v52 }
0x1329   :  { %v895_v55 = vadd.f32 0.5, %v894_v53 }
0x132b   :  { %v896_v56 = vsel %vm1193_vm5, %v1094_v52, %v895_v55 }
0x132c   :  { %899 = vrot.lane.b32.xlu0 %v896_v56, %s1098_s5  ;;  %v897_v59 = vmul.f32 %v896_v56, %v815_v35 }
0x139e   :  { %v900_v57 = vpop.permute.xlu0 %899 }
0x139f   :  { %v902_v58 = vmul.f32 %v900_v57, %v896_v56 }
0x13a1   :  { %904 = vrot.lane.b32.xlu1 %v902_v58, %s1099_s27 }
0x1413   :  { %v905_v60 = vpop.permute.xlu1 %904 }
0x1414   :  { %v907_v61 = vadd.f32 %v905_v60, %v897_v59 }
0x1416   :  { %1095 = vtanh.f32 %v907_v61 }
0x141c   :  { %v1096_v54 = vpop.eup %1095 }
0x141d   :  { %910 = vrot.lane.b32.xlu2 %v1096_v54, %s1098_s5 }
0x1477   :  { %v911_v62 = vpop.permute.xlu2 %910 }
0x1478   :  { %v913_v63 = vmul.f32 %v911_v62, %v896_v56 }
0x147a   :  { %v914_v0 = vpack.c.bf16 %v913_v63, %v913_v63 }
0x147c   :  { %924 = vrot.lane.b32.xlu0 %v914_v0, %s1099_s27 }
0x14ee   :  { %v925_v2 = vpop.permute.xlu0 %924 }
0x14ef   :  { %1013 = vmatmul.msk.bf16.vlgmr.msra.gmra.mxu0 %vm146_vm2, %v925_v2 }
0x156c   :  { %v950_v4 = vpop.f32.mrf.mxu0 }
0x156d   :  { %v951_v5 = vadd.f32 %v1032_v3, %v950_v4 }
0x156f   :  { %954 = vst.msk [vmem:[%s1499_s10] sm:$0xff] %vm59_vm1, %v951_v5 }
0x1574   :  { %v952_v7 = vpop.f32.mrf.mxu0 }

</bundles_post_ra>
